<compile_context>
chip_gen: v5e
topology: v5e:2x2
jax: 0.10.0
libtpu: 0.0.40
codegen_flags: <defaults>
</compile_context>

<pallas_src>
import jax
import jax.numpy as jnp
from jax import lax
from jax.experimental import pallas as pl
from jax.experimental.pallas import tpu as pltpu

THRESH = 0.5
MARGIN = 0.1
SCALE_POS = 2.0
SCALE_NEG = 40.0


def _ms_loss_kernel(lhs_ref, rhs_ref, lab_col_ref, lab_row_ref,
                    p_col_ref, p_row_ref, delta_ref, out_ref):
    """One row tile: lhs [TM, D] bf16, rhs [B, D] bf16 (resident), out [TM, 1] f32."""
    tm = lhs_ref.shape[0]
    row0 = pl.program_id(0) * tm               # global row offset of this tile

    # sim tile = lhs @ rhs^T  (contract feature axis) -> MXU, f32 accumulation.
    sim = lax.dot_general(
        lhs_ref[...], rhs_ref[...],
        dimension_numbers=(((1,), (1,)), ((), ())),
        preferred_element_type=jnp.float32)     # [TM, B] f32

    lab_col = lab_col_ref[...]                  # [TM, 1] int32
    lab_row = lab_row_ref[...]                  # [1, B] int32
    p_col = p_col_ref[...]                      # [TM, 1] f32
    p_row = p_row_ref[...]                      # [1, B] f32
    delta = delta_ref[0]                        # f32 scalar from SMEM

    shape = sim.shape
    local_rows = lax.broadcasted_iota(jnp.int32, shape, 0)
    cols = lax.broadcasted_iota(jnp.int32, shape, 1)
    eye = (local_rows + row0) == cols

    pos_raw = lab_col == lab_row                            # same label
    pos_ok = jnp.logical_and(pos_raw, jnp.logical_not(eye)) # positives w/o diag

    # anchor_negative_dist = pos_pair + (1 - pos_mask)  (fused select)
    anchor_neg = jnp.where(pos_ok, sim, 1.0)
    pos_min = jnp.min(anchor_neg, axis=1, keepdims=True)    # [TM, 1]
    # neg_pair = neg_mask * sim  (fused select)
    neg_pair = jnp.where(pos_raw, 0.0, sim)
    neg_max = jnp.max(neg_pair, axis=1, keepdims=True)      # [TM, 1]

    # probability_m = outer(prob, prob), thresholded by delta
    prob_m = p_col * p_row
    prob_m = jnp.where(prob_m > delta, prob_m, 0.0)

    # weights (mask * prob) as single selects
    w_pos = jnp.where(
        jnp.logical_and(pos_ok, (sim - MARGIN) < neg_max), prob_m, 0.0)
    w_neg = jnp.where(
        jnp.logical_and(jnp.logical_not(pos_raw), (sim + MARGIN) > pos_min),
        prob_m, 0.0)

    # Mask exponent arguments before exp() so overflow never meets a 0 weight.
    neg_clip = jnp.float32(-1e30)
    arg_pos = jnp.where(w_pos > 0.0, -SCALE_POS * (sim - THRESH), neg_clip)
    arg_neg = jnp.where(w_neg > 0.0, SCALE_NEG * (sim - THRESH), neg_clip)

    s_pos = jnp.sum(w_pos * jnp.exp(arg_pos), axis=1, keepdims=True)
    s_neg = jnp.sum(w_neg * jnp.exp(arg_neg), axis=1, keepdims=True)

    loss_vec = ((1.0 / SCALE_POS) * jnp.log(1.0 + s_pos)
                + (1.0 / SCALE_NEG) * jnp.log(1.0 + s_neg))  # [TM, 1]
    out_ref[...] = loss_vec


def multi_similarity_loss(feats, labels, probability_v, delta, *,
                          block_rows=128, compute_dtype=jnp.bfloat16):
    """feats: [B, D], labels: [B] int, probability_v: [B] f32 -> scalar f32."""
    B, D = feats.shape

    # Pad batch to a lane-dense multiple of 128; pick a row tile dividing it.
    b_pad = int(pl.cdiv(B, 128)) * 128
    block_rows = int(min(block_rows, b_pad))
    if b_pad % block_rows:
        block_rows = 128
    num_tiles = b_pad // block_rows
    pad = b_pad - B

    feats_c = feats.astype(compute_dtype)
    labels_i = labels.astype(jnp.int32)
    prob_f = probability_v.astype(jnp.float32)
    if pad:
        sentinel = jnp.min(labels_i) - 1   # never equals a real label
        feats_c = jnp.concatenate(
            [feats_c, jnp.zeros((pad, D), compute_dtype)], axis=0)
        labels_i = jnp.concatenate(
            [labels_i, jnp.full((pad,), sentinel, jnp.int32)])
        prob_f = jnp.concatenate([prob_f, jnp.zeros((pad,), jnp.float32)])

    lab_col = labels_i.reshape(b_pad, 1)
    lab_row = labels_i.reshape(1, b_pad)
    p_col = prob_f.reshape(b_pad, 1)
    p_row = prob_f.reshape(1, b_pad)
    delta_arr = jnp.asarray([delta], dtype=jnp.float32)   # runtime SMEM scalar

    itemsize = jnp.dtype(compute_dtype).itemsize
    vmem_est = (2 * b_pad * D * itemsize          # resident RHS (double-buffered)
                + 2 * block_rows * D * itemsize   # LHS tile (double-buffered)
                + 10 * block_rows * b_pad * 4     # live f32 [TM, B] temporaries
                + 8 * block_rows * 128 * 4)       # small col / out buffers
    vmem_limit = int(min(max(2 * vmem_est, 32 * 1024 * 1024), 64 * 1024 * 1024))

    cost = pl.CostEstimate(
        flops=2 * b_pad * b_pad * D,
        transcendentals=2 * b_pad * b_pad,
        bytes_accessed=(2 * b_pad * D * itemsize        # feats (lhs + rhs reads)
                        + 2 * b_pad * 8                 # labels + probs (both layouts)
                        + b_pad * 4))                   # per-row loss output

    per_row = pl.pallas_call(
        _ms_loss_kernel,
        out_shape=jax.ShapeDtypeStruct((b_pad, 1), jnp.float32),
        grid=(num_tiles,),
        in_specs=[
            pl.BlockSpec((block_rows, D), lambda i: (i, 0)),        # lhs row tile
            pl.BlockSpec((b_pad, D), lambda i: (0, 0)),             # rhs, resident
            pl.BlockSpec((block_rows, 1), lambda i: (i, 0)),        # labels column tile
            pl.BlockSpec((1, b_pad), lambda i: (0, 0)),             # labels row, resident
            pl.BlockSpec((block_rows, 1), lambda i: (i, 0)),        # prob column tile
            pl.BlockSpec((1, b_pad), lambda i: (0, 0)),             # prob row, resident
            pl.BlockSpec(memory_space=pltpu.MemorySpace.SMEM),      # delta scalar
        ],
        out_specs=pl.BlockSpec((block_rows, 1), lambda i: (i, 0)),
        compiler_params=pltpu.CompilerParams(
            dimension_semantics=("parallel",),
            vmem_limit_bytes=vmem_limit),
        cost_estimate=cost,
    )(feats_c, feats_c, lab_col, lab_row, p_col, p_row, delta_arr)

    # Padded rows contribute exactly 0; divide by the real batch size.
    return jnp.sum(per_row) / jnp.float32(B)


def _reference_loss(feats, labels, probability_v, delta,
                    compute_dtype=jnp.bfloat16):
    """Pure-JAX mirror of the PyTorch forward (same matmul precision as kernel)."""
    fc = feats.astype(compute_dtype)
    sim = lax.dot_general(fc, fc, dimension_numbers=(((1,), (1,)), ((), ())),
                          preferred_element_type=jnp.float32)
    B = feats.shape[0]
    eye = jnp.eye(B, dtype=bool)
    pos_raw = labels[None, :] == labels[:, None]
    neg_mask = (~pos_raw).astype(jnp.float32)
    pos_mask = (pos_raw & ~eye).astype(jnp.float32)
    p = probability_v.astype(jnp.float32).reshape(-1, 1)
    prob_m = p @ p.T
    prob_m = jnp.where(prob_m > delta, prob_m, 0.0)
    neg_pair = neg_mask * sim
    pos_pair = pos_mask * sim
    anchor_neg = pos_pair + (1.0 - pos_mask)
    pos_min = jnp.min(anchor_neg, axis=1)
    neg_max = jnp.max(neg_pair, axis=1)
    mask_n = (sim + MARGIN > pos_min[:, None]).astype(jnp.float32)
    mask_p = (sim - MARGIN < neg_max[:, None]).astype(jnp.float32)
    w_neg = neg_mask * mask_n * prob_m
    w_pos = pos_mask * mask_p * prob_m
    pos_loss = (1.0 / SCALE_POS) * jnp.log(
        1.0 + jnp.sum(jnp.exp(-SCALE_POS * (sim - THRESH)) * w_pos, axis=1))
    neg_loss = (1.0 / SCALE_NEG) * jnp.log(
        1.0 + jnp.sum(jnp.exp(SCALE_NEG * (sim - THRESH)) * w_neg, axis=1))
    return jnp.mean(pos_loss + neg_loss)


if __name__ == "__main__":
    B, D = 8, 32
    delta = 0.25

    key = jax.random.PRNGKey(0)
    k_f, k_l, k_p = jax.random.split(key, 3)
    feats = jax.random.normal(k_f, (B, D), dtype=jnp.float32)
    # L2-normalize features (typical for similarity losses; keeps exp() tame)
    feats = feats / jnp.linalg.norm(feats, axis=1, keepdims=True)
    labels = jax.random.randint(k_l, (B,), 0, 3, dtype=jnp.int32)
    probability_v = jax.random.uniform(k_p, (B,), dtype=jnp.float32)

    loss = multi_similarity_loss(feats, labels, probability_v, delta)
    loss = jax.block_until_ready(loss)

    ref = _reference_loss(feats, labels, probability_v, delta)
    assert jnp.allclose(loss, ref, rtol=2e-4, atol=1e-5), (loss, ref)

    print("KERNEL_OK")
</pallas_src>

<mosaic_0001>
module attributes {stable_mosaic.version = 11 : i64} {
  func.func @_ms_loss_kernel(%arg0: i32, %arg1: memref<128x32xbf16, #tpu.memory_space<vmem>>, %arg2: memref<128x32xbf16, #tpu.memory_space<vmem>>, %arg3: memref<128x1xi32, #tpu.memory_space<vmem>>, %arg4: memref<1x128xi32, #tpu.memory_space<vmem>>, %arg5: memref<128x1xf32, #tpu.memory_space<vmem>>, %arg6: memref<1x128xf32, #tpu.memory_space<vmem>>, %arg7: memref<1xf32, #tpu.memory_space<smem>>, %arg8: memref<128x1xf32, #tpu.memory_space<vmem>>) attributes {dimension_semantics = [#tpu.dimension_semantics<parallel>], iteration_bounds = array<i64: 1>, scalar_prefetch = 0 : i64, scratch_operands = 0 : i64, tpu.core_type = #tpu.core_type<tc>, window_params = [{transform_indices = @transform_0, window_bounds = array<i64: 128, 32>}, {pipeline_mode = #tpu.pipeline_mode<synchronous>, transform_indices = @transform_1, window_bounds = array<i64: 128, 32>}, {transform_indices = @transform_2, window_bounds = array<i64: 128, 1>}, {pipeline_mode = #tpu.pipeline_mode<synchronous>, transform_indices = @transform_3, window_bounds = array<i64: 1, 128>}, {transform_indices = @transform_4, window_bounds = array<i64: 128, 1>}, {pipeline_mode = #tpu.pipeline_mode<synchronous>, transform_indices = @transform_5, window_bounds = array<i64: 1, 128>}, {transform_indices = @transform_6, window_bounds = array<i64: 1>}, {transform_indices = @transform_7, window_bounds = array<i64: 128, 1>}]} {
    %c128_i32 = arith.constant 128 : i32
    %0 = arith.muli %arg0, %c128_i32 : i32
    %c0 = arith.constant 0 : index
    %c0_0 = arith.constant 0 : index
    %1 = vector.load %arg1[%c0, %c0_0] : memref<128x32xbf16, #tpu.memory_space<vmem>>, vector<128x32xbf16>
    %c0_1 = arith.constant 0 : index
    %c0_2 = arith.constant 0 : index
    %2 = vector.load %arg2[%c0_1, %c0_2] : memref<128x32xbf16, #tpu.memory_space<vmem>>, vector<128x32xbf16>
    %cst = arith.constant dense<0.000000e+00> : vector<128x128xf32>
    %3 = tpu.matmul %1, %2, %cst {dimension_numbers = #tpu.dot_dimension_numbers<[1], [1], [0], [0], [0, 0, 1, 0], [], []>} : vector<128x32xbf16>, vector<128x32xbf16>, vector<128x128xf32> -> vector<128x128xf32>
    %c0_3 = arith.constant 0 : index
    %c0_4 = arith.constant 0 : index
    %4 = vector.load %arg3[%c0_3, %c0_4] : memref<128x1xi32, #tpu.memory_space<vmem>>, vector<128x1xi32>
    %c0_5 = arith.constant 0 : index
    %c0_6 = arith.constant 0 : index
    %5 = vector.load %arg4[%c0_5, %c0_6] : memref<1x128xi32, #tpu.memory_space<vmem>>, vector<1x128xi32>
    %c0_7 = arith.constant 0 : index
    %c0_8 = arith.constant 0 : index
    %6 = vector.load %arg5[%c0_7, %c0_8] : memref<128x1xf32, #tpu.memory_space<vmem>>, vector<128x1xf32>
    %c0_9 = arith.constant 0 : index
    %c0_10 = arith.constant 0 : index
    %7 = vector.load %arg6[%c0_9, %c0_10] : memref<1x128xf32, #tpu.memory_space<vmem>>, vector<1x128xf32>
    %c0_11 = arith.constant 0 : index
    %8 = memref.load %arg7[%c0_11] : memref<1xf32, #tpu.memory_space<smem>>
    %9 = tpu.iota {dimensions = array<i32: 0>} : vector<128x128xi32>
    %10 = tpu.iota {dimensions = array<i32: 1>} : vector<128x128xi32>
    %11 = vector.broadcast %0 : i32 to vector<128x128xi32>
    %12 = arith.addi %9, %11 : vector<128x128xi32>
    %13 = arith.cmpi eq, %12, %10 : vector<128x128xi32>
    %14 = vector.broadcast %4 : vector<128x1xi32> to vector<128x128xi32>
    %15 = vector.broadcast %5 : vector<1x128xi32> to vector<128x128xi32>
    %16 = arith.cmpi eq, %14, %15 : vector<128x128xi32>
    %cst_12 = arith.constant dense<true> : vector<128x128xi1>
    %17 = arith.xori %13, %cst_12 : vector<128x128xi1>
    %18 = arith.andi %16, %17 : vector<128x128xi1>
    %cst_13 = arith.constant 1.000000e+00 : f32
    %19 = vector.broadcast %cst_13 : f32 to vector<128x128xf32>
    %20 = arith.select %18, %3, %19 : vector<128x128xi1>, vector<128x128xf32>
    %cst_14 = arith.constant dense<0x7F800000> : vector<128xf32>
    %21 = vector.multi_reduction <minimumf>, %20, %cst_14 [1] : vector<128x128xf32> to vector<128xf32>
    %22 = vector.shape_cast %21 : vector<128xf32> to vector<128x1xf32>
    %cst_15 = arith.constant 0.000000e+00 : f32
    %23 = vector.broadcast %cst_15 : f32 to vector<128x128xf32>
    %24 = arith.select %16, %23, %3 : vector<128x128xi1>, vector<128x128xf32>
    %cst_16 = arith.constant dense<0xFF800000> : vector<128xf32>
    %25 = vector.multi_reduction <maximumf>, %24, %cst_16 [1] : vector<128x128xf32> to vector<128xf32>
    %26 = vector.shape_cast %25 : vector<128xf32> to vector<128x1xf32>
    %27 = vector.broadcast %6 : vector<128x1xf32> to vector<128x128xf32>
    %28 = vector.broadcast %7 : vector<1x128xf32> to vector<128x128xf32>
    %29 = arith.mulf %27, %28 : vector<128x128xf32>
    %30 = vector.broadcast %8 : f32 to vector<128x128xf32>
    %31 = arith.cmpf ogt, %29, %30 : vector<128x128xf32>
    %cst_17 = arith.constant 0.000000e+00 : f32
    %32 = vector.broadcast %cst_17 : f32 to vector<128x128xf32>
    %33 = arith.select %31, %29, %32 : vector<128x128xi1>, vector<128x128xf32>
    %cst_18 = arith.constant 1.000000e-01 : f32
    %34 = vector.broadcast %cst_18 : f32 to vector<128x128xf32>
    %35 = arith.subf %3, %34 : vector<128x128xf32>
    %36 = vector.broadcast %26 : vector<128x1xf32> to vector<128x128xf32>
    %37 = arith.cmpf olt, %35, %36 : vector<128x128xf32>
    %38 = arith.andi %18, %37 : vector<128x128xi1>
    %cst_19 = arith.constant 0.000000e+00 : f32
    %39 = vector.broadcast %cst_19 : f32 to vector<128x128xf32>
    %40 = arith.select %38, %33, %39 : vector<128x128xi1>, vector<128x128xf32>
    %cst_20 = arith.constant dense<true> : vector<128x128xi1>
    %41 = arith.xori %16, %cst_20 : vector<128x128xi1>
    %cst_21 = arith.constant 1.000000e-01 : f32
    %42 = vector.broadcast %cst_21 : f32 to vector<128x128xf32>
    %43 = arith.addf %3, %42 : vector<128x128xf32>
    %44 = vector.broadcast %22 : vector<128x1xf32> to vector<128x128xf32>
    %45 = arith.cmpf ogt, %43, %44 : vector<128x128xf32>
    %46 = arith.andi %41, %45 : vector<128x128xi1>
    %cst_22 = arith.constant 0.000000e+00 : f32
    %47 = vector.broadcast %cst_22 : f32 to vector<128x128xf32>
    %48 = arith.select %46, %33, %47 : vector<128x128xi1>, vector<128x128xf32>
    %cst_23 = arith.constant 0.000000e+00 : f32
    %49 = vector.broadcast %cst_23 : f32 to vector<128x128xf32>
    %50 = arith.cmpf ogt, %40, %49 : vector<128x128xf32>
    %cst_24 = arith.constant 5.000000e-01 : f32
    %51 = vector.broadcast %cst_24 : f32 to vector<128x128xf32>
    %52 = arith.subf %3, %51 : vector<128x128xf32>
    %cst_25 = arith.constant -2.000000e+00 : f32
    %53 = vector.broadcast %cst_25 : f32 to vector<128x128xf32>
    %54 = arith.mulf %53, %52 : vector<128x128xf32>
    %cst_26 = arith.constant -1.000000e+30 : f32
    %55 = vector.broadcast %cst_26 : f32 to vector<128x128xf32>
    %56 = arith.select %50, %54, %55 : vector<128x128xi1>, vector<128x128xf32>
    %cst_27 = arith.constant 0.000000e+00 : f32
    %57 = vector.broadcast %cst_27 : f32 to vector<128x128xf32>
    %58 = arith.cmpf ogt, %48, %57 : vector<128x128xf32>
    %cst_28 = arith.constant 5.000000e-01 : f32
    %59 = vector.broadcast %cst_28 : f32 to vector<128x128xf32>
    %60 = arith.subf %3, %59 : vector<128x128xf32>
    %cst_29 = arith.constant 4.000000e+01 : f32
    %61 = vector.broadcast %cst_29 : f32 to vector<128x128xf32>
    %62 = arith.mulf %61, %60 : vector<128x128xf32>
    %cst_30 = arith.constant -1.000000e+30 : f32
    %63 = vector.broadcast %cst_30 : f32 to vector<128x128xf32>
    %64 = arith.select %58, %62, %63 : vector<128x128xi1>, vector<128x128xf32>
    %65 = math.exp %56 : vector<128x128xf32>
    %66 = arith.mulf %40, %65 : vector<128x128xf32>
    %cst_31 = arith.constant dense<0.000000e+00> : vector<128xf32>
    %67 = vector.multi_reduction <add>, %66, %cst_31 [1] : vector<128x128xf32> to vector<128xf32>
    %68 = vector.shape_cast %67 : vector<128xf32> to vector<128x1xf32>
    %69 = math.exp %64 : vector<128x128xf32>
    %70 = arith.mulf %48, %69 : vector<128x128xf32>
    %cst_32 = arith.constant dense<0.000000e+00> : vector<128xf32>
    %71 = vector.multi_reduction <add>, %70, %cst_32 [1] : vector<128x128xf32> to vector<128xf32>
    %72 = vector.shape_cast %71 : vector<128xf32> to vector<128x1xf32>
    %cst_33 = arith.constant 1.000000e+00 : f32
    %73 = vector.broadcast %cst_33 : f32 to vector<128x1xf32>
    %74 = arith.addf %73, %68 : vector<128x1xf32>
    %75 = math.log %74 : vector<128x1xf32>
    %cst_34 = arith.constant 5.000000e-01 : f32
    %76 = vector.broadcast %cst_34 : f32 to vector<128x1xf32>
    %77 = arith.mulf %76, %75 : vector<128x1xf32>
    %cst_35 = arith.constant 1.000000e+00 : f32
    %78 = vector.broadcast %cst_35 : f32 to vector<128x1xf32>
    %79 = arith.addf %78, %72 : vector<128x1xf32>
    %80 = math.log %79 : vector<128x1xf32>
    %cst_36 = arith.constant 2.500000e-02 : f32
    %81 = vector.broadcast %cst_36 : f32 to vector<128x1xf32>
    %82 = arith.mulf %81, %80 : vector<128x1xf32>
    %83 = arith.addf %77, %82 : vector<128x1xf32>
    %c0_37 = arith.constant 0 : index
    %c0_38 = arith.constant 0 : index
    %84 = vector.load %arg8[%c0_37, %c0_38] : memref<128x1xf32, #tpu.memory_space<vmem>>, vector<128x1xf32>
    tpu.vector_store %arg8[%c0_37, %c0_38], %83 {strides = array<i32>} : memref<128x1xf32, #tpu.memory_space<vmem>>, vector<128x1xf32>,
    return
  }
  func.func @transform_0(%arg0: i32) -> (i32, i32) {
    %c0_i32 = arith.constant 0 : i32
    %c0_i32_0 = arith.constant 0 : i32
    return %arg0, %c0_i32 : i32, i32
  }
  func.func @transform_1(%arg0: i32) -> (i32, i32) {
    %c0_i32 = arith.constant 0 : i32
    %c0_i32_0 = arith.constant 0 : i32
    %c0_i32_1 = arith.constant 0 : i32
    return %c0_i32, %c0_i32_0 : i32, i32
  }
  func.func @transform_2(%arg0: i32) -> (i32, i32) {
    %c0_i32 = arith.constant 0 : i32
    %c0_i32_0 = arith.constant 0 : i32
    return %arg0, %c0_i32 : i32, i32
  }
  func.func @transform_3(%arg0: i32) -> (i32, i32) {
    %c0_i32 = arith.constant 0 : i32
    %c0_i32_0 = arith.constant 0 : i32
    %c0_i32_1 = arith.constant 0 : i32
    return %c0_i32, %c0_i32_0 : i32, i32
  }
  func.func @transform_4(%arg0: i32) -> (i32, i32) {
    %c0_i32 = arith.constant 0 : i32
    %c0_i32_0 = arith.constant 0 : i32
    return %arg0, %c0_i32 : i32, i32
  }
  func.func @transform_5(%arg0: i32) -> (i32, i32) {
    %c0_i32 = arith.constant 0 : i32
    %c0_i32_0 = arith.constant 0 : i32
    %c0_i32_1 = arith.constant 0 : i32
    return %c0_i32, %c0_i32_0 : i32, i32
  }
  func.func @transform_6(%arg0: i32) -> i32 {
    %c0_i32 = arith.constant 0 : i32
    %c0_i32_0 = arith.constant 0 : i32
    return %c0_i32 : i32
  }
  func.func @transform_7(%arg0: i32) -> (i32, i32) {
    %c0_i32 = arith.constant 0 : i32
    %c0_i32_0 = arith.constant 0 : i32
    return %arg0, %c0_i32 : i32, i32
  }
}

</mosaic_0001>

<bundles_post_ra>
// kernel: tpu_custom_call.1
= control target key start
LH: loop header
LB: loop body
LE: loop exit
PB: predicated region body
PF: predicated region fallthrough
CT: control target
= control target key end

     0   :  { %vm140_vm0 = vcmask 261120   ;;  %v1510_v0 = vmov 0   ;;  %v273_v59 = vlaneseq  ;;  %vm2693_vm4 = vmmov 1   ;;  %s2673_s2 = inlined_call_operand.vmem [shape: s32[128,1], index: 2, kind: input, shape index: {}]   ;;  %s2674_s1 = inlined_call_operand.vmem [shape: bf16[128,32], index: 1, kind: input, shape index: {}]   ;;  %s2675_s3 = inlined_call_operand.vmem [shape: s32[1,128], index: 3, kind: input, shape index: {}]   ;;  %s2676_s5 = inlined_call_operand.vmem [shape: f32[1,128], index: 5, kind: input, shape index: {}]   ;;  %s2677_s4 = inlined_call_operand.vmem [shape: f32[128,1], index: 4, kind: input, shape index: {}]   ;;  %s2678_s0 = inlined_call_operand.vmem [shape: bf16[128,32], index: 0, kind: input, shape index: {}]   ;;  %s2679_s6 = inlined_call_operand.<no memory space> [shape: f32[1], index: 6, kind: input, shape index: {}]   ;;  %s2680_s7 = inlined_call_operand.vmem [shape: f32[128,1], index: 7, kind: output, shape index: {}]  }
   0x1   :  { %1377 = vset.pattern.permute.xlu0 %v1510_v0  ;;  %v238_v1 = vld [vmem:[%s2673_s2] sm:$0xff]  ;;  %1378 = vset.pattern.permute.xlu1 %v1510_v0  ;;  %v240_v2 = vld [vmem:[%s2673_s2 + $0x10] sm:$0xff]  ;;  %v1350_v3 = vld [vmem:[%s2674_s1 + $0x38] sm:$0xff] }
   0x2   :  { %326 = vperm.xlu0 %1377, %v238_v1   ;;  %332 = vperm.xlu1 %1378, %v240_v2   ;;  %v187_v4 = vsel %vm140_vm0, %v1350_v3, 0  ;;  %v242_v5 = vld [vmem:[%s2673_s2 + $0x20] sm:$0xff]  ;;  %v1349_v6 = vld [vmem:[%s2674_s1 + $0x30] sm:$0xff]  ;;  %v239_v7 = vld [vmem:[%s2673_s2 + $0x8] sm:$0xff]  ;;  %v1718_v61 = vshrl.u32 %v273_v59, 7  ;;  %v1720_v62 = vand.u32 127, %v273_v59 }
   0x3   :  { %1379 = vset.pattern.permute.xlu2 %v1510_v0  ;;  %189 = vmatpush.bf16.xpose.msra.mxu0 %v187_v4  ;;  %v241_v8 = vld [vmem:[%s2673_s2 + $0x18] sm:$0xff]  ;;  %v184_v9 = vsel %vm140_vm0, %v1349_v6, 0  ;;  %v243_v10 = vld [vmem:[%s2673_s2 + $0x28] sm:$0xff]  ;;  %v244_v12 = vld [vmem:[%s2673_s2 + $0x30] sm:$0xff] }
   0x4   :  { %1351 = vmatpush.bf16.xpose.msra.mxu1 %v187_v4  ;;  %1352 = vmatpush.bf16.xpose.msra.mxu2 %v187_v4  ;;  %v1348_v11 = vld [vmem:[%s2674_s1 + $0x28] sm:$0xff]  ;;  %v245_v13 = vld [vmem:[%s2673_s2 + $0x38] sm:$0xff]  ;;  %v246_v15 = vld [vmem:[%s2673_s2 + $0x40] sm:$0xff]  ;;  %v289_v63 = vadd.s32 120, %v1718_v61  ;;  %v287_v59 = vadd.s32 104, %v1718_v61 }
   0x5   :  { %1353 = vmatpush.bf16.xpose.msra.mxu3 %v187_v4  ;;  %338 = vperm.xlu2 %1379, %v242_v5   ;;  %v181_v14 = vsel %vm140_vm0, %v1348_v11, 0  ;;  %v1347_v16 = vld [vmem:[%s2674_s1 + $0x20] sm:$0xff]  ;;  %v247_v17 = vld [vmem:[%s2673_s2 + $0x48] sm:$0xff]  ;;  %v248_v18 = vld [vmem:[%s2673_s2 + $0x50] sm:$0xff] }
   0x6   :  { %v178_v19 = vsel %vm140_vm0, %v1347_v16, 0  ;;  %v249_v20 = vld [vmem:[%s2673_s2 + $0x58] sm:$0xff]  ;;  %v250_v22 = vld [vmem:[%s2673_s2 + $0x60] sm:$0xff]  ;;  %v251_v23 = vld [vmem:[%s2673_s2 + $0x68] sm:$0xff]  ;;  %vm324_vm1 = vcmp.eq.s32.totalorder %v289_v63, %v1720_v62  ;;  %v277_v16 = vadd.s32 24, %v1718_v61  ;;  %v2798_v63 = vmov 0 }
   0x7   :  { %v1346_v21 = vld [vmem:[%s2674_s1 + $0x18] sm:$0xff]  ;;  %v252_v25 = vld [vmem:[%s2673_s2 + $0x70] sm:$0xff]  ;;  %v255_v30 = vld [vmem:[%s2677_s4] sm:$0xff] }
   0x8   :  { %v175_v24 = vsel %vm140_vm0, %v1346_v21, 0  ;;  %v1345_v26 = vld [vmem:[%s2674_s1 + $0x10] sm:$0xff]  ;;  %v253_v27 = vld [vmem:[%s2673_s2 + $0x78] sm:$0xff]  ;;  %v1344_v31 = vld [vmem:[%s2674_s1 + $0x8] sm:$0xff]  ;;  %vm312_vm14 = vcmp.eq.s32.totalorder %v277_v16, %v1720_v62 }
   0x9   :  { %v257_v28 = vld [vmem:[%s2677_s4 + $0x10] sm:$0xff]  ;;  %v172_v29 = vsel %vm140_vm0, %v1345_v26, 0  ;;  %v256_v32 = vld [vmem:[%s2677_s4 + $0x8] sm:$0xff]  ;;  %v169_v34 = vsel %vm140_vm0, %v1344_v31, 0  ;;  %v259_v35 = vld [vmem:[%s2677_s4 + $0x20] sm:$0xff]  ;;  %v2754_v26 = vmov 0 }
   0xa   :  { %329 = vperm.xlu0 %1377, %v239_v7   ;;  %335 = vperm.xlu1 %1378, %v241_v8   ;;  %v260_v33 = vld [vmem:[%s2677_s4 + $0x28] sm:$0xff]  ;;  %v1343_v36 = vld [vmem:[%s2674_s1] sm:$0xff]  ;;  %v258_v37 = vld [vmem:[%s2677_s4 + $0x18] sm:$0xff]  ;;  %v285_v8 = vadd.s32 88, %v1718_v61  ;;  %v2770_v31 = vmov 0 }
   0xb   :  { %190 = vmatpush.bf16.xpose.msra.mxu0 %v184_v9  ;;  %v263_v38 = vld [vmem:[%s2677_s4 + $0x40] sm:$0xff]  ;;  %v166_v39 = vsel %vm140_vm0, %v1343_v36, 0  ;;  %v262_v40 = vld [vmem:[%s2677_s4 + $0x38] sm:$0xff]  ;;  %v261_v41 = vld [vmem:[%s2677_s4 + $0x30] sm:$0xff] }
   0xc   :  { %1354 = vmatpush.bf16.xpose.msra.mxu1 %v184_v9  ;;  %1355 = vmatpush.bf16.xpose.msra.mxu2 %v184_v9  ;;  %v266_v42 = vld [vmem:[%s2677_s4 + $0x58] sm:$0xff]  ;;  %v1335_v43 = vld [vmem:[%s2678_s0] sm:$0xff]  ;;  %v1337_v44 = vld [vmem:[%s2678_s0 + $0x10] sm:$0xff]  ;;  %vm320_vm8 = vcmp.eq.s32.totalorder %v285_v8, %v1720_v62 }
   0xd   :  { %1356 = vmatpush.bf16.xpose.msra.mxu3 %v184_v9  ;;  %341 = vperm.xlu2 %1379, %v243_v10   ;;  %v1339_v45 = vld [vmem:[%s2678_s0 + $0x20] sm:$0xff]  ;;  %v1341_v46 = vld [vmem:[%s2678_s0 + $0x30] sm:$0xff]  ;;  %v264_v48 = vld [vmem:[%s2677_s4 + $0x48] sm:$0xff]  ;;  %v2735_v9 = vmov 0 }
   0xe   :  { %v265_v47 = vld [vmem:[%s2677_s4 + $0x50] sm:$0xff]  ;;  %v268_v50 = vld [vmem:[%s2677_s4 + $0x68] sm:$0xff]  ;;  %v267_v51 = vld [vmem:[%s2677_s4 + $0x60] sm:$0xff] }
   0xf   :  { %v269_v49 = vld [vmem:[%s2677_s4 + $0x70] sm:$0xff]  ;;  %v1336_v52 = vld [vmem:[%s2678_s0 + $0x8] sm:$0xff]  ;;  %v1338_v53 = vld [vmem:[%s2678_s0 + $0x18] sm:$0xff] }
  0x10   :  { %v1340_v54 = vld [vmem:[%s2678_s0 + $0x28] sm:$0xff]  ;;  %v1342_v55 = vld [vmem:[%s2678_s0 + $0x38] sm:$0xff]  ;;  %v1731_v2 = vld [vmem:[%s2675_s3] ss:$0 sm:$0xff] }
  0x11   :  { %v270_v56 = vld [vmem:[%s2677_s4 + $0x78] sm:$0xff]  ;;  %vm1740_vm5 = vmxor %vm324_vm1, %vm2693_vm4 }
  0x12   :  { %344 = vperm.xlu0 %1377, %v244_v12   ;;  %347 = vperm.xlu1 %1378, %v245_v13   ;;  %vm401_vm10 = vmxor %vm320_vm8, %vm2693_vm4  ;;  %v281_v13 = vadd.s32 56, %v1718_v61 }
  0x13   :  { %191 = vmatpush.bf16.xpose.msra.mxu0 %v181_v14 }
  0x14   :  { %1357 = vmatpush.bf16.xpose.msra.mxu1 %v181_v14  ;;  %1358 = vmatpush.bf16.xpose.msra.mxu2 %v181_v14  ;;  %vm316_vm12 = vcmp.eq.s32.totalorder %v281_v13, %v1720_v62  ;;  %v276_v13 = vadd.s32 16, %v1718_v61 }
  0x15   :  { %1359 = vmatpush.bf16.xpose.msra.mxu3 %v181_v14  ;;  %350 = vperm.xlu2 %1379, %v246_v15   ;;  %v2737_v14 = vmov 0 }
  0x1a   :  { %353 = vperm.xlu0 %1377, %v247_v17   ;;  %356 = vperm.xlu1 %1378, %v248_v18   ;;  %v2740_v18 = vmov 0 }
  0x1b   :  { %192 = vmatpush.bf16.xpose.msra.mxu0 %v178_v19 }
  0x1c   :  { %1360 = vmatpush.bf16.xpose.msra.mxu1 %v178_v19  ;;  %1361 = vmatpush.bf16.xpose.msra.mxu2 %v178_v19 }
  0x1d   :  { %1362 = vmatpush.bf16.xpose.msra.mxu3 %v178_v19  ;;  %359 = vperm.xlu2 %1379, %v249_v20   ;;  %v2743_v19 = vmov 0 }
  0x22   :  { %362 = vperm.xlu0 %1377, %v250_v22   ;;  %365 = vperm.xlu1 %1378, %v251_v23   ;;  %v2748_v22 = vmov 0  ;;  %v2750_v23 = vmov 0 }
  0x23   :  { %193 = vmatpush.bf16.xpose.msra.mxu0 %v175_v24 }
  0x24   :  { %1363 = vmatpush.bf16.xpose.msra.mxu1 %v175_v24  ;;  %1364 = vmatpush.bf16.xpose.msra.mxu2 %v175_v24 }
  0x25   :  { %1365 = vmatpush.bf16.xpose.msra.mxu3 %v175_v24  ;;  %368 = vperm.xlu2 %1379, %v252_v25   ;;  %v2752_v25 = vmov 0 }
  0x2a   :  { %371 = vperm.xlu0 %1377, %v253_v27   ;;  %530 = vperm.xlu1 %1378, %v257_v28   ;;  %v2757_v27 = vmov 0  ;;  %v2759_v28 = vmov 0 }
  0x2b   :  { %194 = vmatpush.bf16.xpose.msra.mxu0 %v172_v29 }
  0x2c   :  { %1366 = vmatpush.bf16.xpose.msra.mxu1 %v172_v29  ;;  %1367 = vmatpush.bf16.xpose.msra.mxu2 %v172_v29 }
  0x2d   :  { %1368 = vmatpush.bf16.xpose.msra.mxu3 %v172_v29  ;;  %520 = vperm.xlu2 %1379, %v255_v30   ;;  %v2762_v29 = vmov 0  ;;  %v2766_v30 = vmov 0 }
  0x32   :  { %525 = vperm.xlu0 %1377, %v256_v32   ;;  %545 = vperm.xlu1 %1378, %v260_v33   ;;  %v2774_v32 = vmov 0  ;;  %v286_v33 = vadd.s32 96, %v1718_v61 }
  0x33   :  { %195 = vmatpush.bf16.xpose.msra.mxu0 %v169_v34 }
  0x34   :  { %1369 = vmatpush.bf16.xpose.msra.mxu1 %v169_v34  ;;  %1370 = vmatpush.bf16.xpose.msra.mxu2 %v169_v34 }
  0x35   :  { %1371 = vmatpush.bf16.xpose.msra.mxu3 %v169_v34  ;;  %540 = vperm.xlu2 %1379, %v259_v35   ;;  %v282_v34 = vadd.s32 64, %v1718_v61  ;;  %v278_v35 = vadd.s32 32, %v1718_v61 }
  0x3a   :  { %535 = vperm.xlu0 %1377, %v258_v37   ;;  %560 = vperm.xlu1 %1378, %v263_v38   ;;  %v2778_v38 = vmov 0 }
  0x3b   :  { %196 = vmatpush.bf16.xpose.msra.mxu0 %v166_v39 }
  0x3c   :  { %1372 = vmatpush.bf16.xpose.msra.mxu1 %v166_v39  ;;  %1373 = vmatpush.bf16.xpose.msra.mxu2 %v166_v39 }
  0x3d   :  { %1374 = vmatpush.bf16.xpose.msra.mxu3 %v166_v39  ;;  %555 = vperm.xlu2 %1379, %v262_v40  }
  0x42   :  { %550 = vperm.xlu0 %1377, %v261_v41   ;;  %575 = vperm.xlu1 %1378, %v266_v42   ;;  %v2783_v41 = vmov 0  ;;  %v275_v42 = vadd.s32 8, %v1718_v61 }
  0x43   :  { %1295 = vmatmul.msk.bf16.vlgmr.msra.gmra.mxu0 %vm140_vm0, %v1335_v43  ;;  %1297 = vmatmul.msk.bf16.vlgmr.msra.gmra.mxu1 %vm140_vm0, %v1337_v44 }
  0x44   :  { %1299 = vmatmul.msk.bf16.vlgmr.msra.gmra.mxu2 %vm140_vm0, %v1339_v45  ;;  %1301 = vmatmul.msk.bf16.vlgmr.msra.gmra.mxu3 %vm140_vm0, %v1341_v46 }
  0x45   :  { %570 = vperm.xlu2 %1379, %v265_v47  }
  0x4a   :  { %565 = vperm.xlu0 %1377, %v264_v48   ;;  %590 = vperm.xlu1 %1378, %v269_v49  }
  0x4d   :  { %585 = vperm.xlu2 %1379, %v268_v50  }
  0x52   :  { %580 = vperm.xlu0 %1377, %v267_v51   ;;  %v279_v51 = vadd.s32 40, %v1718_v61 }
  0x53   :  { %1296 = vmatmul.msk.bf16.gmra.mxu0 %vm140_vm0, %v1336_v52  ;;  %1298 = vmatmul.msk.bf16.gmra.mxu1 %vm140_vm0, %v1338_v53  ;;  %v2793_v53 = vmov 0 }
  0x54   :  { %1300 = vmatmul.msk.bf16.gmra.mxu2 %vm140_vm0, %v1340_v54  ;;  %1302 = vmatmul.msk.bf16.gmra.mxu3 %vm140_vm0, %v1342_v55  ;;  %vm397_vm0 = vmxor %vm316_vm12, %vm2693_vm4 }
  0x5a   :  { %595 = vperm.xlu0 %1377, %v270_v56  }
  0x5f   :  { %v1712_v57 = vpop.permute.xlu2 %338 }
  0x67   :  { %v1723_v0 = vpop.permute.xlu2 %341 }
  0x6f   :  { %v1744_v5 = vpop.permute.xlu2 %350 }
  0x74   :  { %v1714_v58 = vpop.permute.xlu0 %326  ;;  %v1716_v60 = vpop.permute.xlu1 %332 }
  0x75   :  { %vm2682_vm2 = vcmp.eq.s32.totalorder %v1714_v58, %v1731_v2 }
  0x76   :  { %vm1750_vm6 = vmxor %vm2682_vm2, %vm2693_vm4  ;;  %vm2688_vm2 = vcmp.eq.s32.totalorder %v1712_v57, %v1731_v2 }
  0x77   :  { %v1768_v11 = vpop.permute.xlu2 %359 }
  0x78   :  { %vm2683_vm9 = vcmp.eq.s32.totalorder %v1768_v11, %v1731_v2 }
  0x79   :  { %vm1779_vm11 = vmand %vm2683_vm9, %vm401_vm10  ;;  %vm2686_vm10 = vcmp.eq.s32.totalorder %v1744_v5, %v1731_v2 }
  0x7a   :  { %v2738_v14 = vsel %vm1779_vm11, 4294967295, %v2737_v14 }
  0x7b   :  { %2739 = vst [vmem:[#allocation3_spill] sm:$0xff] %v2738_v14 }
  0x7c   :  { %v1726_v1 = vpop.permute.xlu0 %329  ;;  %v1733_v3 = vpop.permute.xlu1 %335 }
  0x7d   :  { %vm2681_vm3 = vcmp.eq.s32.totalorder %v1726_v1, %v1731_v2  ;;  %vm2684_vm15 = vcmp.eq.s32.totalorder %v1733_v3, %v1731_v2 }
  0x7e   :  { %vm1761_vm7 = vmxor %vm2681_vm3, %vm2693_vm4 }
  0x7f   :  { %v2736_v9 = vsel %vm1761_vm7, 4294967295, %v2735_v9  ;;  %vm393_vm3 = vmxor %vm312_vm14, %vm2693_vm4  ;;  %v1848_v24 = vpop.permute.xlu2 %368 }
  0x80   :  { %vm1812_vm12 = vmand %vm2684_vm15, %vm393_vm3 }
  0x81   :  { %v2744_v19 = vsel %vm1812_vm12, 4294967295, %v2743_v19  ;;  %vm1834_vm3 = vmxor %vm2686_vm10, %vm2693_vm4 }
  0x82   :  { %2745 = vst [vmem:[#allocation5_spill] sm:$0xff] %v2744_v19  ;;  %v2749_v22 = vsel %vm1834_vm3, 4294967295, %v2748_v22 }
  0x84   :  { %v1754_v7 = vpop.permute.xlu0 %344  ;;  %v1766_v10 = vpop.permute.xlu1 %347 }
  0x85   :  { %vm2687_vm13 = vcmp.eq.s32.totalorder %v1766_v10, %v1731_v2 }
  0x86   :  { %vm1800_vm8 = vmand %vm2687_vm13, %vm397_vm0  ;;  %vm2689_vm0 = vcmp.eq.s32.totalorder %v1723_v0, %v1731_v2  ;;  %vm2691_vm13 = vcmp.eq.s32.totalorder %v1848_v24, %v1731_v2 }
  0x87   :  { %v2741_v18 = vsel %vm1800_vm8, 4294967295, %v2740_v18  ;;  %vm1854_vm10 = vmxor %vm2689_vm0, %vm2693_vm4  ;;  %vm2756_vm0 = vcmp.eq.s32.totalorder %v1716_v60, %v1731_v2 }
  0x88   :  { %2742 = vst [vmem:[#allocation4_spill] sm:$0xff] %v2741_v18  ;;  %v2753_v25 = vsel %vm1854_vm10, 4294967295, %v2752_v25  ;;  %vm1874_vm7 = vmxor %vm2756_vm0, %vm2693_vm4  ;;  %vm2765_vm0 = vcmp.eq.s32.totalorder %v1766_v10, %v1731_v2 }
  0x89   :  { %v2758_v27 = vsel %vm1874_vm7, 4294967295, %v2757_v27  ;;  %vm1882_vm10 = vmxor %vm2691_vm13, %vm2693_vm4  ;;  %vm2769_vm13 = vcmp.eq.s32.totalorder %v1733_v3, %v1731_v2 }
  0x8a   :  { %v2760_v28 = vsel %vm1882_vm10, 4294967295, %v2759_v28  ;;  %vm1898_vm7 = vmxor %vm2765_vm0, %vm2693_vm4  ;;  %vm309_vm0 = vcmp.eq.s32.totalorder %v1718_v61, %v1720_v62 }
  0x8b   :  { %2761 = vst [vmem:[#allocation6_spill] sm:$0xff] %v2760_v28  ;;  %v2767_v30 = vsel %vm1898_vm7, 4294967295, %v2766_v30  ;;  %vm1906_vm10 = vmxor %vm2769_vm13, %vm2693_vm4  ;;  %vm2777_vm13 = vcmp.eq.s32.totalorder %v1714_v58, %v1731_v2 }
  0x8c   :  { %v1772_v12 = vpop.permute.xlu0 %353  ;;  %v1783_v15 = vpop.permute.xlu1 %356  ;;  %2768 = vst [vmem:[#allocation8_spill] sm:$0xff] %v2767_v30  ;;  %v2771_v31 = vsel %vm1906_vm10, 4294967295, %v2770_v31  ;;  %vm390_vm7 = vmxor %vm309_vm0, %vm2693_vm4  ;;  %vm2780_vm0 = vcmp.eq.s32.totalorder %v1712_v57, %v1731_v2 }
  0x8d   :  { %vm2692_vm15 = vcmp.eq.s32.totalorder %v1783_v15, %v1731_v2  ;;  %2772 = vst [vmem:[#allocation9_spill] sm:$0xff] %v2771_v31 }
  0x94   :  { %v1792_v17 = vpop.permute.xlu0 %362  ;;  %v1818_v20 = vpop.permute.xlu1 %365 }
  0x95   :  { %vm2685_vm1 = vcmp.eq.s32.totalorder %v1792_v17, %v1731_v2  ;;  %vm2690_vm9 = vcmp.eq.s32.totalorder %v1818_v20, %v1731_v2  ;;  %vm2782_vm3 = vcmp.eq.s32.totalorder %v1792_v17, %v1731_v2 }
  0x96   :  { %vm1824_vm14 = vmxor %vm2685_vm1, %vm2693_vm4 }
  0x97   :  { %vm1844_vm1 = vmxor %vm2688_vm2, %vm2693_vm4 }
  0x98   :  { %v2751_v23 = vsel %vm1844_vm1, 4294967295, %v2750_v23  ;;  %vm1864_vm2 = vmxor %vm2690_vm9, %vm2693_vm4 }
  0x99   :  { %v2755_v26 = vsel %vm1864_vm2, 4294967295, %v2754_v26  ;;  %vm1890_vm9 = vmxor %vm2692_vm15, %vm2693_vm4  ;;  %vm2773_vm15 = vcmp.eq.s32.totalorder %v1768_v11, %v1731_v2 }
  0x9a   :  { %v2763_v29 = vsel %vm1890_vm9, 4294967295, %v2762_v29  ;;  %vm1914_vm9 = vmxor %vm2773_vm15, %vm2693_vm4  ;;  %vm317_vm4 = vcmp.eq.s32.totalorder %v282_v34, %v1720_v62  ;;  %v2804_v34 = vmov 0 }
  0x9b   :  { %2764 = vst [vmem:[#allocation7_spill] sm:$0xff] %v2763_v29  ;;  %v2775_v32 = vsel %vm1914_vm9, 4294967295, %v2774_v32  ;;  %vm1931_vm15 = vmand %vm2777_vm13, %vm390_vm7  ;;  %vm321_vm9 = vcmp.eq.s32.totalorder %v286_v33, %v1720_v62  ;;  %vm313_vm7 = vcmp.eq.s32.totalorder %v278_v35, %v1720_v62  ;;  %vm2781_vm13 = vmmov 1  }
  0x9c   :  { %2776 = vst [vmem:[#allocation10_spill] sm:$0xff] %v2775_v32  ;;  %v2779_v38 = vsel %vm1931_vm15, 4294967295, %v2778_v38  ;;  %vm402_vm10 = vmxor %vm321_vm9, %vm2781_vm13  ;;  %vm2785_vm9 = vcmp.eq.s32.totalorder %v1744_v5, %v1731_v2 }
  0x9d   :  { %vm398_vm2 = vmxor %vm317_vm4, %vm2781_vm13  ;;  %vm2788_vm4 = vcmp.eq.s32.totalorder %v1712_v57, %v1731_v2  ;;  %v283_v57 = vadd.s32 72, %v1718_v61 }
  0x9e   :  { %vm394_vm1 = vmxor %vm313_vm7, %vm2781_vm13  ;;  %vm2792_vm7 = vcmp.eq.s32.totalorder %v1726_v1, %v1731_v2 }
  0xc0   :  { %v1924_v36 = vpop.f32.mrf.mxu0  ;;  %v1926_v37 = vpop.f32.mrf.mxu1 }
  0xc1   :  { %v474_v39 = vsel %vm2780_vm0, 0.0, %v1926_v37  ;;  %v422_v40 = vsel %vm1931_vm15, %v1924_v36, 1.0  ;;  %vm1951_vm0 = vmand %vm2782_vm3, %vm402_vm10  ;;  %v1307_v19 = vadd.f32 -0.1, %v1926_v37  ;;  %v1303_v21 = vadd.f32 -0.1, %v1924_v36 }
  0xc2   :  { %494 = vmax.xlane.f32.xlu2 %v474_v39  ;;  %438 = vmin.xlane.f32.xlu1 %v422_v40  ;;  %v2784_v41 = vsel %vm1951_vm0, 4294967295, %v2783_v41  ;;  %vm1963_vm15 = vmand %vm2785_vm9, %vm398_vm2  ;;  %vm310_vm2 = vcmp.eq.s32.totalorder %v275_v42, %v1720_v62  ;;  %v280_v42 = vadd.s32 48, %v1718_v61 }
  0xc3   :  { %vm1973_vm10 = vmand %vm2788_vm4, %vm394_vm1  ;;  %vm2795_vm4 = vcmp.eq.s32.totalorder %v1714_v58, %v1731_v2 }
  0xc4   :  { %v426_v49 = vsel %vm1973_vm10, %v1926_v37, 1.0  ;;  %vm391_vm3 = vmxor %vm310_vm2, %vm2781_vm13  ;;  %v470_v54 = vsel %vm2795_vm4, 0.0, %v1924_v36  ;;  %vm314_vm2 = vcmp.eq.s32.totalorder %v279_v51, %v1720_v62 }
  0xc5   :  { %vm2791_vm1 = vmmov %vm2785_vm9 }
  0xc6   :  { %vm1995_vm9 = vmand %vm2792_vm7, %vm391_vm3 }
  0xc7   :  { %v1956_v43 = vpop.f32.mrf.mxu2  ;;  %v1958_v44 = vpop.f32.mrf.mxu3  ;;  %v2794_v53 = vsel %vm1995_vm9, 4294967295, %v2793_v53  ;;  %vm395_vm3 = vmxor %vm314_vm2, %vm2781_vm13  ;;  %vm2800_vm2 = vcmp.eq.s32.totalorder %v1792_v17, %v1731_v2  ;;  %v2801_v17 = vmov 0 }
  0xc8   :  { %v434_v46 = vsel %vm1951_vm0, %v1958_v44, 1.0  ;;  %v430_v48 = vsel %vm1963_vm15, %v1956_v43, 1.0  ;;  %v1985_v50 = vpop.f32.mrf.mxu0  ;;  %v478_v52 = vsel %vm2791_vm1, 0.0, %v1956_v43  ;;  %v2007_v56 = vpop.f32.mrf.mxu1  ;;  %vm2796_vm1 = vcmp.eq.s32.totalorder %v1723_v0, %v1731_v2 }
  0xc9   :  { %462 = vmin.xlane.f32.xlu0 %v434_v46  ;;  %v423_v55 = vsel %vm1995_vm9, %v1985_v50, 1.0  ;;  %v475_v58 = vsel %vm2796_vm1, 0.0, %v2007_v56  ;;  %vm2797_vm7 = vmmov %vm2796_vm1  ;;  %v482_v5 = vsel %vm2800_vm2, 0.0, %v1958_v44  ;;  %vm318_vm9 = vcmp.eq.s32.totalorder %v283_v57, %v1720_v62 }
  0xca   :  { %454 = vmin.xlane.f32.xlu2 %v430_v48  ;;  %446 = vmin.xlane.f32.xlu1 %v426_v49  ;;  %vm2019_vm4 = vmand %vm2797_vm7, %vm395_vm3  ;;  %vm322_vm1 = vcmp.eq.s32.totalorder %v287_v59, %v1720_v62  ;;  %vm2699_vm3 = vcmp.eq.s32.totalorder %v1772_v12, %v1731_v2  ;;  %v288_v46 = vadd.s32 112, %v1718_v61  ;;  %v2808_v48 = vmov 0 }
  0xcb   :  { %v2799_v63 = vsel %vm2019_vm4, 4294967295, %v2798_v63  ;;  %v427_v8 = vsel %vm2019_vm4, %v2007_v56, 1.0  ;;  %vm399_vm7 = vmxor %vm318_vm9, %vm2781_vm13  ;;  %vm2803_vm9 = vcmp.eq.s32.totalorder %v1818_v20, %v1731_v2  ;;  %v2816_v59 = vmov 0 }
  0xcc   :  { %vm403_vm0 = vmxor %vm322_vm1, %vm2781_vm13  ;;  %vm2806_vm1 = vcmp.eq.s32.totalorder %v1726_v1, %v1731_v2  ;;  %v742_v47 = vadd.f32 0.1, %v1958_v44  ;;  %v1308_v45 = vadd.f32 -0.1, %v2007_v56 }
  0xcd   :  { %vm2044_vm2 = vmand %vm2699_vm3, %vm399_vm7  ;;  %v471_v39 = vsel %vm2806_vm1, 0.0, %v1985_v50  ;;  %vm311_vm7 = vcmp.eq.s32.totalorder %v276_v13, %v1720_v62  ;;  %vm2811_vm1 = vcmp.eq.s32.totalorder %v1772_v12, %v1731_v2 }
  0xce   :  { %v2802_v17 = vsel %vm2044_vm2, 4294967295, %v2801_v17  ;;  %vm2054_vm4 = vmand %vm2803_vm9, %vm403_vm0  ;;  %vm2807_vm0 = vcmp.eq.s32.totalorder %v1716_v60, %v1731_v2 }
  0xcf   :  { %v2035_v0 = vpop.f32.mrf.mxu2  ;;  %v2039_v16 = vpop.f32.mrf.mxu3  ;;  %v2805_v34 = vsel %vm2054_vm4, 4294967295, %v2804_v34  ;;  %vm392_vm3 = vmxor %vm311_vm7, %vm2781_vm13  ;;  %vm2812_vm7 = vcmp.eq.s32.totalorder %v1818_v20, %v1731_v2  ;;  %v284_v20 = vadd.s32 80, %v1718_v61 }
  0xd0   :  { %v431_v33 = vsel %vm2044_vm2, %v2035_v0, 1.0  ;;  %v435_v35 = vsel %vm2054_vm4, %v2039_v16, 1.0  ;;  %v2067_v40 = vpop.f32.mrf.mxu0  ;;  %vm2074_vm9 = vmand %vm2807_vm0, %vm392_vm3  ;;  %v479_v49 = vsel %vm2811_vm1, 0.0, %v2035_v0  ;;  %v483_v51 = vsel %vm2812_vm7, 0.0, %v2039_v16 }
  0xd1   :  { %502 = vmax.xlane.f32.xlu0 %v478_v52  ;;  %v2809_v48 = vsel %vm2074_vm9, 4294967295, %v2808_v48  ;;  %v424_v1 = vsel %vm2074_vm9, %v2067_v40, 1.0  ;;  %vm315_vm3 = vcmp.eq.s32.totalorder %v280_v42, %v1720_v62  ;;  %vm323_vm0 = vcmp.eq.s32.totalorder %v288_v46, %v1720_v62  ;;  %v2094_v52 = vpop.f32.mrf.mxu1 }
  0xd2   :  { %486 = vmax.xlane.f32.xlu1 %v470_v54  ;;  %440 = vmin.xlane.f32.xlu2 %v423_v55  ;;  %2810 = vst [vmem:[#allocation11_spill] sm:$0xff] %v2809_v48  ;;  %vm2703_vm9 = vcmp.eq.s32.totalorder %v1754_v7, %v1731_v2  ;;  %vm396_vm4 = vmxor %vm315_vm3, %vm2781_vm13  ;;  %vm2815_vm3 = vcmp.eq.s32.totalorder %v1848_v24, %v1731_v2 }
  0xd3   :  { %vm404_vm1 = vmxor %vm323_vm0, %vm2781_vm13  ;;  %v476_v61 = vsel %vm2703_vm9, 0.0, %v2094_v52 }
  0xd4   :  { %vm2103_vm7 = vmand %vm2703_vm9, %vm396_vm4  ;;  %vm319_vm4 = vcmp.eq.s32.totalorder %v284_v20, %v1720_v62  ;;  %v2831_v20 = vmov 0 }
  0xd5   :  { %v428_v57 = vsel %vm2103_vm7, %v2094_v52, 1.0  ;;  %vm2113_vm2 = vmand %vm2815_vm3, %vm404_vm1  ;;  %vm2821_vm1 = vcmp.eq.s32.totalorder %v1716_v60, %v1731_v2  ;;  %vm2822_vm3 = vcmp.eq.s32.totalorder %v1783_v15, %v1731_v2 }
  0xd6   :  { %v2817_v59 = vsel %vm2113_vm2, 4294967295, %v2816_v59  ;;  %vm400_vm0 = vmxor %vm319_vm4, %vm2781_vm13  ;;  %v472_v13 = vsel %vm2821_vm1, 0.0, %v2067_v40 }
  0xd7   :  { %v2097_v54 = vpop.f32.mrf.mxu3  ;;  %2818 = vst [vmem:[#allocation12_spill] sm:$0xff] %v2817_v59  ;;  %vm2137_vm9 = vmand %vm2822_vm3, %vm400_vm0  ;;  %vm2829_vm0 = vcmp.eq.s32.totalorder %v1848_v24, %v1731_v2 }
  0xd8   :  { %vm2826_vm4 = vmmov %vm2822_vm3  ;;  %v2148_v60 = vpop.f32.mrf.mxu0  ;;  %v484_v42 = vsel %vm2829_vm0, 0.0, %v2097_v54  ;;  %vm2835_vm0 = vcmp.eq.s32.totalorder %v1766_v10, %v1731_v2 }
  0xd9   :  { %496 = vmax.xlane.f32.xlu0 %v475_v58  ;;  %v436_v58 = vsel %vm2113_vm2, %v2097_v54, 1.0  ;;  %2827 = vst [vmem:[#allocation16_spill] sm:$0xff] %v2148_v60  ;;  %v425_v15 = vsel %vm1812_vm12, %v2148_v60, 1.0 }
  0xda   :  { %510 = vmax.xlane.f32.xlu1 %v482_v5  ;;  %448 = vmin.xlane.f32.xlu2 %v427_v8  ;;  %v2126_v5 = vpop.f32.mrf.mxu2  ;;  %v2128_v8 = vpop.permute.xlu0 %371 }
  0xdb   :  { %2819 = vst [vmem:[#allocation13_spill] sm:$0xff] %v2126_v5  ;;  %v432_v62 = vsel %vm2137_vm9, %v2126_v5, 1.0  ;;  %vm2716_vm1 = vcmp.eq.s32.totalorder %v2128_v8, %v1731_v2 }
  0xdc   :  { %2820 = vst [vmem:[#allocation14_spill] sm:$0xff] %v2128_v8  ;;  %vm2173_vm3 = vmand %vm2716_vm1, %vm1740_vm5  ;;  %vm2838_vm5 = vcmp.eq.s32.totalorder %v1768_v11, %v1731_v2  ;;  %v730_v8 = vadd.f32 0.1, %v1924_v36 }
  0xdd   :  { %v2832_v20 = vsel %vm2173_vm3, 4294967295, %v2831_v20 }
  0xde   :  { %2833 = vst [vmem:[#allocation19_spill] sm:$0xff] %v2832_v20 }
  0xdf   :  { %v2166_v24 = vpop.f32.mrf.mxu3 }
  0xe0   :  { %2830 = vst [vmem:[#allocation18_spill] sm:$0xff] %v2166_v24  ;;  %v485_v10 = vsel %vm2716_vm1, 0.0, %v2166_v24 }
  0xe1   :  { %456 = vmin.xlane.f32.xlu0 %v431_v33  ;;  %v2823_v33 = vmov 0 }
  0xe2   :  { %464 = vmin.xlane.f32.xlu1 %v435_v35  ;;  %488 = vmax.xlane.f32.xlu2 %v471_v39  ;;  %v2824_v33 = vsel %vm2137_vm9, 4294967295, %v2823_v33  ;;  %v480_v35 = vsel %vm2826_vm4, 0.0, %v2126_v5  ;;  %v2150_v39 = vpop.f32.mrf.mxu1  ;;  %vm2834_vm4 = vcmp.eq.s32.totalorder %v1733_v3, %v1731_v2 }
  0xe3   :  { %2825 = vst [vmem:[#allocation15_spill] sm:$0xff] %v2824_v33  ;;  %v429_v46 = vsel %vm1800_vm8, %v2150_v39, 1.0  ;;  %v477_v4 = vsel %vm2835_vm0, 0.0, %v2150_v39 }
  0xe4   :  { %2828 = vst [vmem:[#allocation17_spill] sm:$0xff] %v2150_v39 }
  0xe9   :  { %442 = vmin.xlane.f32.xlu0 %v424_v1  ;;  %v2162_v1 = vpop.permute.xlu0 %525 }
  0xea   :  { %504 = vmax.xlane.f32.xlu1 %v479_v49  ;;  %512 = vmax.xlane.f32.xlu2 %v483_v51  ;;  %v521_v49 = vpop.permute.xlu2 %520  ;;  %v531_v51 = vpop.permute.xlu1 %530 }
  0xf1   :  { %450 = vmin.xlane.f32.xlu0 %v428_v57  ;;  %v437_v57 = vsel %vm2173_vm3, %v2166_v24, 1.0  ;;  %v1323_v24 = vadd.f32 -0.5, %v1926_v37 }
  0xf2   :  { %498 = vmax.xlane.f32.xlu1 %v476_v61  ;;  %466 = vmin.xlane.f32.xlu2 %v436_v58  ;;  %v473_v61 = vsel %vm2834_vm4, 0.0, %v2148_v60  ;;  %v2188_v58 = vpop.permute.xlu0 %535 }
  0xf3   :  { %2836 = vst [vmem:[#allocation20_spill] sm:$0xff] %v2188_v58  ;;  %v830_v29 = vmul.f32 -2.0, %v1323_v24 }
  0xf9   :  { %490 = vmax.xlane.f32.xlu0 %v472_v13  ;;  %v2190_v13 = vpop.f32.mrf.mxu2 }
  0xfa   :  { %458 = vmin.xlane.f32.xlu1 %v432_v62  ;;  %506 = vmax.xlane.f32.xlu2 %v480_v35  ;;  %2837 = vst [vmem:[#allocation21_spill] sm:$0xff] %v2190_v13  ;;  %v541_v62 = vpop.permute.xlu2 %540  ;;  %v2192_v35 = vpop.permute.xlu1 %545  ;;  %v481_v3 = vsel %vm2838_vm5, 0.0, %v2190_v13 }
 0x101   :  { %514 = vmax.xlane.f32.xlu0 %v484_v42  ;;  %v433_v42 = vsel %vm1779_vm11, %v2190_v13, 1.0  ;;  %v2227_v13 = vstv %s2679_s6 }
 0x102   :  { %452 = vmin.xlane.f32.xlu1 %v429_v46  ;;  %444 = vmin.xlane.f32.xlu2 %v425_v15  ;;  %v2205_v46 = vpop.permute.xlu0 %550  ;;  %v556_v15 = vpop.permute.xlu2 %555 }
 0x109   :  { %468 = vmin.xlane.f32.xlu0 %v437_v57  ;;  %v561_v57 = vpop.permute.xlu1 %560 }
 0x10a   :  { %492 = vmax.xlane.f32.xlu1 %v473_v61  ;;  %500 = vmax.xlane.f32.xlu2 %v477_v4  ;;  %v2207_v61 = vpop.permute.xlu0 %565  ;;  %v2209_v11 = vpop.permute.xlu2 %570 }
 0x111   :  { %508 = vmax.xlane.f32.xlu0 %v481_v3  ;;  %v2211_v4 = vpop.permute.xlu1 %575 }
 0x112   :  { %516 = vmax.xlane.f32.xlu1 %v485_v10  ;;  %460 = vmin.xlane.f32.xlu2 %v433_v42  ;;  %2839 = vst [vmem:[#allocation22_spill] sm:$0xff] %v2211_v4  ;;  %v581_v3 = vpop.permute.xlu0 %580  ;;  %v2213_v32 = vpop.permute.xlu2 %585  ;;  %v2220_v10 = vld [vmem:[%s2676_s5] ss:$0 sm:$0xff] }
 0x113   :  { %v605_v42 = vmul.f32 %v2220_v10, %v541_v62  ;;  %v601_v14 = vmul.f32 %v2220_v10, %v521_v49  ;;  %v2237_v49 = vadd.f32 -0.5, %v1924_v36  ;;  %v603_v30 = vmul.f32 %v2220_v10, %v531_v51 }
 0x114   :  { %v613_v59 = vmul.f32 %v2220_v10, %v581_v3  ;;  %v609_v33 = vmul.f32 %v2220_v10, %v561_v57  ;;  %v2255_v51 = vadd.f32 -0.5, %v1958_v44  ;;  %v738_v57 = vadd.f32 0.1, %v1956_v43 }
 0x115   :  { %vm622_vm4 = vcmp.gt.f32.partialorder %v605_v42, %v2227_v13  ;;  %vm618_vm0 = vcmp.gt.f32.partialorder %v601_v14, %v2227_v13 }
 0x116   :  { %v638_v4 = vsel %vm622_vm4, %v605_v42, 0.0  ;;  %v2243_v60 = vsel %vm618_vm0, %v601_v14, 0.0  ;;  %vm620_vm4 = vcmp.gt.f32.partialorder %v603_v30, %v2227_v13  ;;  %vm630_vm0 = vcmp.gt.f32.partialorder %v613_v59, %v2227_v13 }
 0x117   :  { %v1327_v42 = vadd.f32 -0.5, %v1956_v43 }
 0x119   :  { %v2215_v20 = vpop.permute.xlu1 %590 }
 0x11a   :  { %v2230_v18 = vpop.permute.xlu0 %595 }
 0x11b   :  { %2840 = vst [vmem:[#allocation23_spill] sm:$0xff] %v2230_v18  ;;  %v734_v18 = vadd.f32 0.1, %v1926_v37 }
 0x135   :  { %v495_v62 = vpop.xlane.xlu2 %494  ;;  %v439_v31 = vpop.xlane.xlu1 %438 }
 0x136   :  { %vm670_vm5 = vcmp.lt.f32.partialorder %v1307_v19, %v495_v62  ;;  %vm746_vm1 = vcmp.gt.f32.partialorder %v730_v8, %v439_v31  ;;  %v874_v31 = vmul.f32 40.0, %v2237_v49  ;;  %v2260_v62 = vsel %vm620_vm4, %v603_v30, 0.0 }
 0x137   :  { %vm686_vm3 = vmand %vm1973_vm10, %vm670_vm5  ;;  %vm2841_vm5 = vnez %v2749_v22  ;;  %v606_v22 = vmul.f32 %v2220_v10, %v2192_v35 }
 0x138   :  { %vm762_vm11 = vmand %vm1750_vm6, %vm746_vm1  ;;  %v702_v39 = vsel %vm686_vm3, %v638_v4, 0.0  ;;  %vm626_vm6 = vcmp.gt.f32.partialorder %v609_v33, %v2227_v13 }
 0x139   :  { %vm798_vm8 = vcmp.gt.f32.partialorder %v702_v39, 0.0  ;;  %v778_v19 = vsel %vm762_vm11, %v2243_v60, 0.0  ;;  %v642_v30 = vsel %vm626_vm6, %v609_v33, 0.0 }
 0x13a   :  { %v846_v14 = vsel %vm798_vm8, %v830_v29, -1e+30  ;;  %vm858_vm10 = vcmp.gt.f32.partialorder %v778_v19, 0.0  ;;  %v2263_v29 = vmul.f32 %v2220_v10, %v556_v15 }
 0x13b   :  { %v914_v8 = vmul.f32 1.442695, %v846_v14  ;;  %v890_v6 = vsel %vm858_vm10, %v874_v31, -1e+30  ;;  %v2265_v31 = vsel %vm630_vm0, %v613_v59, 0.0  ;;  %v886_v59 = vmul.f32 40.0, %v2255_v51 }
 0x13c   :  { %v463_v37 = vpop.xlane.xlu0 %462  ;;  %v986_v3 = vmul.f32 1.442695, %v890_v6  ;;  %v602_v6 = vmul.f32 %v2220_v10, %v2162_v1  ;;  %vm2842_vm10 = vnez %v2751_v23  ;;  %v878_v1 = vmul.f32 40.0, %v1323_v24 }
 0x13d   :  { %vm758_vm11 = vcmp.gt.f32.partialorder %v742_v47, %v463_v37  ;;  %v455_v48 = vpop.xlane.xlu2 %454  ;;  %v447_v14 = vpop.xlane.xlu1 %446  ;;  %1382 = vpow2.f32 %v914_v8  ;;  %v1311_v23 = vadd.f32 -0.1, %v1956_v43  ;;  %v731_v24 = vadd.f32 0.1, %v1985_v50 }
 0x13e   :  { %vm774_vm8 = vmand %vm1824_vm14, %vm758_vm11  ;;  %vm754_vm1 = vcmp.gt.f32.partialorder %v738_v57, %v455_v48  ;;  %vm750_vm3 = vcmp.gt.f32.partialorder %v734_v18, %v447_v14  ;;  %1384 = vpow2.f32 %v986_v3  ;;  %v882_v48 = vmul.f32 40.0, %v1327_v42 }
 0x13f   :  { %vm770_vm4 = vmand %vm2841_vm5, %vm754_vm1  ;;  %v790_v15 = vsel %vm774_vm8, %v2265_v31, 0.0  ;;  %vm619_vm8 = vcmp.gt.f32.partialorder %v602_v6, %v2227_v13 }
 0x140   :  { %vm766_vm0 = vmand %vm2842_vm10, %vm750_vm3  ;;  %vm870_vm14 = vcmp.gt.f32.partialorder %v790_v15, 0.0  ;;  %v786_v18 = vsel %vm770_vm4, %v642_v30, 0.0  ;;  %vm623_vm3 = vcmp.gt.f32.partialorder %v606_v22, %v2227_v13  ;;  %v2296_v43 = vsel %vm619_vm8, %v602_v6, 0.0 }
 0x141   :  { %v2280_v47 = vsel %vm766_vm0, %v638_v4, 0.0  ;;  %v902_v8 = vsel %vm870_vm14, %v886_v59, -1e+30  ;;  %vm866_vm6 = vcmp.gt.f32.partialorder %v786_v18, 0.0  ;;  %vm2843_vm0 = vnez %v2779_v38 }
 0x142   :  { %vm862_vm11 = vcmp.gt.f32.partialorder %v2280_v47, 0.0  ;;  %v1010_v33 = vmul.f32 1.442695, %v902_v8  ;;  %v898_v37 = vsel %vm866_vm6, %v882_v48, -1e+30  ;;  %v2289_v48 = vadd.f32 -0.5, %v1985_v50 }
 0x143   :  { %v1383_v57 = vpop.eup %1382  ;;  %v894_v36 = vsel %vm862_vm11, %v878_v1, -1e+30  ;;  %v1002_v3 = vmul.f32 1.442695, %v898_v37  ;;  %v826_v1 = vmul.f32 -2.0, %v2237_v49  ;;  %vm2844_vm6 = vnez %v2736_v9 }
 0x144   :  { %v1385_v14 = vpop.eup %1384  ;;  %v503_v4 = vpop.xlane.xlu0 %502  ;;  %v942_v59 = vmul.f32 %v1383_v57, %v702_v39  ;;  %v994_v58 = vmul.f32 1.442695, %v894_v36  ;;  %1386 = vpow2.f32 %v1010_v33  ;;  %v639_v9 = vsel %vm623_vm3, %v606_v22, 0.0 }
 0x145   :  { %vm674_vm1 = vcmp.lt.f32.partialorder %v1311_v23, %v503_v4  ;;  %v487_v35 = vpop.xlane.xlu1 %486  ;;  %v441_v5 = vpop.xlane.xlu2 %440  ;;  %v1018_v28 = vmul.f32 %v1385_v14, %v778_v19  ;;  %1388 = vpow2.f32 %v1002_v3  ;;  %v834_v19 = vmul.f32 -2.0, %v1327_v42 }
 0x146   :  { %vm690_vm5 = vmand %vm1963_vm15, %vm674_vm1  ;;  %vm666_vm4 = vcmp.lt.f32.partialorder %v1303_v21, %v487_v35  ;;  %vm747_vm10 = vcmp.gt.f32.partialorder %v731_v24, %v441_v5  ;;  %962 = vadd.xlane.f32.xlu1 %v942_v59  ;;  %1390 = vpow2.f32 %v994_v58  ;;  %v1315_v5 = vadd.f32 -0.1, %v1958_v44 }
 0x147   :  { %vm682_vm14 = vmand %vm2843_vm0, %vm666_vm4  ;;  %v2300_v39 = vsel %vm690_vm5, %v642_v30, 0.0  ;;  %v875_v42 = vmul.f32 40.0, %v2289_v48  ;;  %v735_v36 = vadd.f32 0.1, %v2007_v56  ;;  %v614_v22 = vmul.f32 %v2220_v10, %v2213_v32 }
 0x148   :  { %vm763_vm11 = vmand %vm2844_vm6, %vm747_vm10  ;;  %vm802_vm15 = vcmp.gt.f32.partialorder %v2300_v39, 0.0  ;;  %v698_v58 = vsel %vm682_vm14, %v2243_v60, 0.0  ;;  %v1324_v60 = vadd.f32 -0.5, %v2007_v56  ;;  %v610_v59 = vmul.f32 %v2220_v10, %v2207_v61 }
 0x149   :  { %v850_v6 = vsel %vm802_vm15, %v834_v19, -1e+30  ;;  %vm794_vm8 = vcmp.gt.f32.partialorder %v698_v58, 0.0  ;;  %v2310_v38 = vsel %vm763_vm11, %v2296_v43, 0.0  ;;  %vm2845_vm5 = vnez %v2799_v63 }
 0x14a   :  { %v1387_v30 = vpop.eup %1386  ;;  %v922_v49 = vmul.f32 1.442695, %v850_v6  ;;  %v842_v21 = vsel %vm794_vm8, %v826_v1, -1e+30  ;;  %vm859_vm1 = vcmp.gt.f32.partialorder %v2310_v38, 0.0  ;;  %vm2846_vm14 = vnez %v2784_v41 }
 0x14b   :  { %v1389_v44 = vpop.eup %1388  ;;  %v2316_v8 = vmul.f32 %v1387_v30, %v790_v15  ;;  %v906_v33 = vmul.f32 1.442695, %v842_v21  ;;  %v891_v37 = vsel %vm859_vm1, %v875_v42, -1e+30  ;;  %v1304_v32 = vadd.f32 -0.1, %v1985_v50 }
 0x14c   :  { %v1391_v57 = vpop.eup %1390  ;;  %v497_v23 = vpop.xlane.xlu0 %496  ;;  %1392 = vpow2.f32 %v922_v49  ;;  %v988_v3 = vmul.f32 1.442695, %v891_v37  ;;  %v2320_v14 = vmul.f32 %v1389_v44, %v786_v18  ;;  %v831_v18 = vmul.f32 -2.0, %v1324_v60 }
 0x14d   :  { %vm671_vm3 = vcmp.lt.f32.partialorder %v1308_v45, %v497_v23  ;;  %v511_v4 = vpop.xlane.xlu1 %510  ;;  %v449_v24 = vpop.xlane.xlu2 %448  ;;  %v1022_v15 = vmul.f32 %v1391_v57, %v2280_v47  ;;  %1394 = vpow2.f32 %v906_v33  ;;  %v838_v47 = vmul.f32 -2.0, %v2255_v51 }
 0x14e   :  { %vm687_vm4 = vmand %vm2845_vm5, %vm671_vm3  ;;  %vm678_vm10 = vcmp.lt.f32.partialorder %v1315_v5, %v511_v4  ;;  %vm751_vm0 = vcmp.gt.f32.partialorder %v735_v36, %v449_v24  ;;  %1034 = vadd.xlane.f32.xlu1 %v1018_v28  ;;  %1396 = vpow2.f32 %v988_v3  ;;  %vm2847_vm11 = vnez %v2753_v25 }
 0x14f   :  { %vm694_vm6 = vmand %vm2846_vm14, %vm678_vm10  ;;  %1042 = vadd.xlane.f32.xlu0 %v1022_v15  ;;  %v2332_v56 = vsel %vm687_vm4, %v639_v9, 0.0  ;;  %v739_v63 = vadd.f32 0.1, %v2035_v0  ;;  %v743_v61 = vadd.f32 0.1, %v2039_v16  ;;  %v879_v35 = vmul.f32 40.0, %v1324_v60 }
 0x150   :  { %vm767_vm15 = vmand %vm2847_vm11, %vm751_vm0  ;;  %vm799_vm8 = vcmp.gt.f32.partialorder %v2332_v56, 0.0  ;;  %v2341_v28 = vsel %vm694_vm6, %v2265_v31, 0.0  ;;  %vm631_vm3 = vcmp.gt.f32.partialorder %v614_v22, %v2227_v13  ;;  %vm627_vm4 = vcmp.gt.f32.partialorder %v610_v59, %v2227_v13 }
 0x151   :  { %v847_v41 = vsel %vm799_vm8, %v831_v18, -1e+30  ;;  %vm806_vm1 = vcmp.gt.f32.partialorder %v2341_v28, 0.0  ;;  %v2344_v50 = vsel %vm767_vm15, %v639_v9, 0.0  ;;  %v2350_v31 = vadd.f32 -0.5, %v2035_v0 }
 0x152   :  { %v1393_v19 = vpop.eup %1392  ;;  %v916_v25 = vmul.f32 1.442695, %v847_v41  ;;  %v854_v51 = vsel %vm806_vm1, %v838_v47, -1e+30  ;;  %vm863_vm5 = vcmp.gt.f32.partialorder %v2344_v50, 0.0  ;;  %vm625_vm10 = vcmp.gt.f32.partialorder %v2263_v29, %v2227_v13 }
 0x153   :  { %v1395_v1 = vpop.eup %1394  ;;  %v930_v45 = vmul.f32 1.442695, %v854_v51  ;;  %v895_v5 = vsel %vm863_vm5, %v879_v35, -1e+30  ;;  %v2355_v9 = vadd.f32 -0.5, %v2039_v16  ;;  %vm2848_vm0 = vcmp.eq.s32.totalorder %v1772_v12, %v1731_v2 }
 0x154   :  { %v1397_v6 = vpop.eup %1396  ;;  %v457_v42 = vpop.xlane.xlu0 %456  ;;  %v938_v30 = vmul.f32 %v1395_v1, %v698_v58  ;;  %1398 = vpow2.f32 %v916_v25  ;;  %v996_v49 = vmul.f32 1.442695, %v895_v5  ;;  %vm723_vm14 = vmxor %vm2848_vm0, %vm2781_vm13  ;;  %v946_v33 = vmul.f32 %v1393_v19, %v2300_v39 }
 0x155   :  { %vm755_vm6 = vcmp.gt.f32.partialorder %v739_v63, %v457_v42  ;;  %v465_v21 = vpop.xlane.xlu1 %464  ;;  %v489_v44 = vpop.xlane.xlu2 %488  ;;  %1400 = vpow2.f32 %v930_v45  ;;  %v2363_v60 = vmul.f32 %v1397_v6, %v2310_v38  ;;  %v643_v58 = vsel %vm627_vm4, %v610_v59, 0.0 }
 0x156   :  { %vm771_vm11 = vmand %vm723_vm14, %vm755_vm6  ;;  %vm759_vm15 = vcmp.gt.f32.partialorder %v743_v61, %v465_v21  ;;  %vm667_vm8 = vcmp.lt.f32.partialorder %v1304_v32, %v489_v44  ;;  %1058 = vadd.xlane.f32.xlu1 %v2316_v8  ;;  %954 = vadd.xlane.f32.xlu2 %v938_v30  ;;  %1402 = vpow2.f32 %v996_v49  ;;  %v647_v12 = vsel %vm631_vm3, %v614_v22, 0.0 }
 0x157   :  { %vm2849_vm1 = vnez %v2755_v26  ;;  %970 = vadd.xlane.f32.xlu0 %v946_v33  ;;  %v732_v39 = vadd.f32 0.1, %v2067_v40  ;;  %v2373_v38 = vsel %vm771_vm11, %v643_v58, 0.0  ;;  %v883_v37 = vmul.f32 40.0, %v2350_v31 }
 0x158   :  { %vm775_vm5 = vmand %vm2849_vm1, %vm759_vm15  ;;  %vm2850_vm4 = vnez %v2794_v53  ;;  %v1312_v8 = vadd.f32 -0.1, %v2035_v0  ;;  %vm867_vm14 = vcmp.gt.f32.partialorder %v2373_v38, 0.0  ;;  %v887_v23 = vmul.f32 40.0, %v2355_v9 }
 0x159   :  { %vm683_vm0 = vmand %vm2850_vm4, %vm667_vm8  ;;  %v2380_v57 = vsel %vm775_vm5, %v647_v12, 0.0  ;;  %v827_v36 = vmul.f32 -2.0, %v2289_v48  ;;  %v899_v3 = vsel %vm867_vm14, %v883_v37, -1e+30  ;;  %v607_v53 = vmul.f32 %v2220_v10, %v2205_v46 }
 0x15a   :  { %v2384_v26 = vsel %vm683_vm0, %v2296_v43, 0.0  ;;  %vm871_vm3 = vcmp.gt.f32.partialorder %v2380_v57, 0.0  ;;  %v1399_v22 = vpop.eup %1398  ;;  %v1004_v0 = vmul.f32 1.442695, %v899_v3  ;;  %v615_v15 = vmul.f32 %v2220_v10, %v2215_v20 }
 0x15b   :  { %vm795_vm6 = vcmp.gt.f32.partialorder %v2384_v26, 0.0  ;;  %v903_v4 = vsel %vm871_vm3, %v887_v23, -1e+30  ;;  %v1401_v24 = vpop.eup %1400  ;;  %v2394_v43 = vadd.f32 -0.5, %v2067_v40  ;;  %v1316_v47 = vadd.f32 -0.1, %v2039_v16 }
 0x15c   :  { %v843_v59 = vsel %vm795_vm6, %v827_v36, -1e+30  ;;  %v1012_v48 = vmul.f32 1.442695, %v903_v4  ;;  %v1403_v32 = vpop.eup %1402  ;;  %v443_v18 = vpop.xlane.xlu0 %442  ;;  %v950_v63 = vmul.f32 %v1401_v24, %v2341_v28  ;;  %1404 = vpow2.f32 %v1004_v0  ;;  %v2855_v23 = vld [vmem:[#allocation6_spill] sm:$0xff] }
 0x15d   :  { %v908_v46 = vmul.f32 1.442695, %v843_v59  ;;  %vm748_vm11 = vcmp.gt.f32.partialorder %v732_v39, %v443_v18  ;;  %v505_v61 = vpop.xlane.xlu1 %504  ;;  %v513_v41 = vpop.xlane.xlu2 %512  ;;  %v943_v35 = vmul.f32 %v1399_v22, %v2332_v56  ;;  %v2400_v20 = vmul.f32 %v1403_v32, %v2344_v50 }
 0x15e   :  { %1406 = vpow2.f32 %v1012_v48  ;;  %v2404_v19 = vmul.f32 %v2220_v10, %v2209_v11  ;;  %vm2851_vm15 = vnez %v2758_v27  ;;  %vm675_vm1 = vcmp.lt.f32.partialorder %v1312_v8, %v505_v61  ;;  %978 = vadd.xlane.f32.xlu2 %v950_v63 }
 0x15f   :  { %vm764_vm8 = vmand %vm2851_vm15, %vm748_vm11  ;;  %vm679_vm5 = vcmp.lt.f32.partialorder %v1316_v47, %v513_v41  ;;  %1408 = vpow2.f32 %v908_v46  ;;  %v2412_v16 = vsel %vm625_vm10, %v2263_v29, 0.0  ;;  %vm624_vm4 = vcmp.gt.f32.partialorder %v607_v53, %v2227_v13  ;;  %964 = vadd.xlane.f32.xlu0 %v943_v35 }
 0x160   :  { %vm2852_vm0 = vnez %v2802_v17  ;;  %v2418_v11 = vsel %vm764_vm8, %v2260_v62, 0.0  ;;  %v876_v27 = vmul.f32 40.0, %v2394_v43  ;;  %vm632_vm3 = vcmp.gt.f32.partialorder %v615_v15, %v2227_v13 }
 0x161   :  { %vm691_vm14 = vmand %vm2852_vm0, %vm675_vm1  ;;  %vm2853_vm6 = vnez %v2805_v34  ;;  %v839_v56 = vmul.f32 -2.0, %v2355_v9  ;;  %vm860_vm10 = vcmp.gt.f32.partialorder %v2418_v11, 0.0  ;;  %v736_v17 = vadd.f32 0.1, %v2094_v52 }
 0x162   :  { %vm695_vm11 = vmand %vm2853_vm6, %vm679_vm5  ;;  %v2425_v29 = vsel %vm691_vm14, %v643_v58, 0.0  ;;  %v892_v50 = vsel %vm860_vm10, %v876_v27, -1e+30  ;;  %v1405_v25 = vpop.eup %1404  ;;  %vm628_vm8 = vcmp.gt.f32.partialorder %v2404_v19, %v2227_v13  ;;  %v1309_v34 = vadd.f32 -0.1, %v2094_v52  ;;  %v2859_v27 = vld [vmem:[#allocation11_spill] sm:$0xff] }
 0x163   :  { %v2429_v28 = vsel %vm695_vm11, %v647_v12, 0.0  ;;  %vm803_vm15 = vcmp.gt.f32.partialorder %v2425_v29, 0.0  ;;  %v835_v51 = vmul.f32 -2.0, %v2350_v31  ;;  %v990_v1 = vmul.f32 1.442695, %v892_v50 }
 0x164   :  { %vm807_vm1 = vcmp.gt.f32.partialorder %v2429_v28, 0.0  ;;  %v1407_v45 = vpop.eup %1406  ;;  %v744_v5 = vadd.f32 0.1, %v2097_v54  ;;  %v2439_v42 = vmul.f32 %v1405_v25, %v2373_v38  ;;  %v1325_v30 = vadd.f32 -0.5, %v2094_v52  ;;  %v451_v49 = vpop.xlane.xlu0 %450 }
 0x165   :  { %v855_v6 = vsel %vm807_vm1, %v839_v56, -1e+30  ;;  %v1409_v9 = vpop.eup %1408  ;;  %v851_v44 = vsel %vm803_vm15, %v835_v51, -1e+30  ;;  %1410 = vpow2.f32 %v990_v1  ;;  %v2445_v33 = vmul.f32 %v1407_v45, %v2380_v57  ;;  %v499_v52 = vpop.xlane.xlu1 %498  ;;  %v2861_v56 = vld [vmem:[#allocation23_spill] sm:$0xff]  ;;  %v2866_v1 = vld [vmem:[#allocation16_spill] sm:$0xff] }
 0x166   :  { %v932_v21 = vmul.f32 1.442695, %v855_v6  ;;  %v640_v31 = vsel %vm624_vm4, %v607_v53, 0.0  ;;  %vm2854_vm5 = vcmp.eq.s32.totalorder %v1754_v7, %v1731_v2  ;;  %vm752_vm14 = vcmp.gt.f32.partialorder %v736_v17, %v451_v49  ;;  %v467_v58 = vpop.xlane.xlu2 %466  ;;  %1050 = vadd.xlane.f32.xlu2 %v2320_v14  ;;  %v2858_v53 = vld [vmem:[#allocation20_spill] sm:$0xff]  ;;  %v2862_v17 = vld [vmem:[#allocation7_spill] sm:$0xff]  ;;  %v2874_v51 = vld [vmem:[#allocation14_spill] sm:$0xff] }
 0x167   :  { %vm720_vm0 = vmxor %vm2854_vm5, %vm2781_vm13  ;;  %v939_v12 = vmul.f32 %v1409_v9, %v2384_v26  ;;  %v2455_v39 = vadd.f32 -0.5, %v2097_v54  ;;  %v2459_v38 = vsel %vm632_vm3, %v615_v15, 0.0  ;;  %vm672_vm11 = vcmp.lt.f32.partialorder %v1309_v34, %v499_v52  ;;  %1036 = vadd.xlane.f32.xlu0 %v2363_v60  ;;  %v2857_v26 = vld [vmem:[#allocation13_spill] sm:$0xff] }
 0x168   :  { %vm768_vm6 = vmand %vm720_vm0, %vm752_vm14  ;;  %vm760_vm4 = vcmp.gt.f32.partialorder %v744_v5, %v467_v58  ;;  %1412 = vpow2.f32 %v932_v21  ;;  %v1305_v7 = vadd.f32 -0.1, %v2067_v40  ;;  %v924_v37 = vmul.f32 1.442695, %v851_v44 }
 0x169   :  { %vm688_vm10 = vmand %vm2103_vm7, %vm672_vm11  ;;  %956 = vadd.xlane.f32.xlu1 %v939_v12  ;;  %v784_v8 = vsel %vm768_vm6, %v640_v31, 0.0  ;;  %v880_v57 = vmul.f32 40.0, %v1325_v30  ;;  %vm2856_vm3 = vnez %v2855_v23  ;;  %v740_v36 = vadd.f32 0.1, %v2857_v26 }
 0x16a   :  { %vm776_vm15 = vmand %vm2856_vm3, %vm760_vm4  ;;  %vm864_vm1 = vcmp.gt.f32.partialorder %v784_v8, 0.0  ;;  %v2469_v3 = vsel %vm688_vm10, %v640_v31, 0.0  ;;  %v832_v14 = vmul.f32 -2.0, %v1325_v30  ;;  %v888_v40 = vmul.f32 40.0, %v2455_v39 }
 0x16b   :  { %v896_v22 = vsel %vm864_vm1, %v880_v57, -1e+30  ;;  %vm800_vm7 = vcmp.gt.f32.partialorder %v2469_v3, 0.0  ;;  %v2473_v55 = vsel %vm776_vm15, %v2459_v38, 0.0  ;;  %v1411_v60 = vpop.eup %1410  ;;  %v2478_v0 = vmul.f32 %v2220_v10, %v2858_v53 }
 0x16c   :  { %v998_v4 = vmul.f32 1.442695, %v896_v22  ;;  %v848_v24 = vsel %vm800_vm7, %v832_v14, -1e+30  ;;  %vm872_vm5 = vcmp.gt.f32.partialorder %v2473_v55, 0.0  ;;  %1414 = vpow2.f32 %v924_v37  ;;  %v491_v18 = vpop.xlane.xlu0 %490 }
 0x16d   :  { %v918_v15 = vmul.f32 1.442695, %v848_v24  ;;  %v2482_v59 = vmul.f32 %v1411_v60, %v2418_v11  ;;  %v904_v48 = vsel %vm872_vm5, %v888_v40, -1e+30  ;;  %v1313_v47 = vadd.f32 -0.1, %v2857_v26  ;;  %v459_v41 = vpop.xlane.xlu1 %458 }
 0x16e   :  { %v1413_v32 = vpop.eup %1412  ;;  %1416 = vpow2.f32 %v998_v4  ;;  %v1329_v63 = vadd.f32 -0.5, %v2857_v26  ;;  %v1014_v46 = vmul.f32 1.442695, %v904_v48  ;;  %v644_v61 = vsel %vm628_vm8, %v2404_v19, 0.0  ;;  %v507_v35 = vpop.xlane.xlu2 %506  ;;  %1044 = vadd.xlane.f32.xlu2 %v2400_v20  ;;  %v2871_v4 = vld [vmem:[#allocation9_spill] sm:$0xff] }
 0x16f   :  { %vm668_vm0 = vcmp.lt.f32.partialorder %v1305_v7, %v491_v18  ;;  %v951_v11 = vmul.f32 %v1413_v32, %v2429_v28  ;;  %1418 = vpow2.f32 %v918_v15  ;;  %vm621_vm14 = vcmp.gt.f32.partialorder %v2478_v0, %v2227_v13  ;;  %v2864_v28 = vld [vmem:[#allocation17_spill] sm:$0xff] }
 0x170   :  { %vm2860_vm6 = vnez %v2859_v27  ;;  %vm756_vm4 = vcmp.gt.f32.partialorder %v740_v36, %v459_v41  ;;  %vm676_vm10 = vcmp.lt.f32.partialorder %v1313_v47, %v507_v35  ;;  %1420 = vpow2.f32 %v1014_v46 }
 0x171   :  { %vm684_vm11 = vmand %vm2860_vm6, %vm668_vm0  ;;  %v2498_v19 = vmul.f32 %v2220_v10, %v2861_v56  ;;  %vm2863_vm8 = vnez %v2862_v17  ;;  %980 = vadd.xlane.f32.xlu1 %v951_v11  ;;  %v737_v50 = vadd.f32 0.1, %v2864_v28  ;;  %v828_v34 = vmul.f32 -2.0, %v2394_v43 }
 0x172   :  { %vm772_vm3 = vmand %vm2863_vm8, %vm756_vm4  ;;  %v700_v25 = vsel %vm684_vm11, %v2260_v62, 0.0  ;;  %v733_v20 = vadd.f32 0.1, %v2866_v1  ;;  %v884_v5 = vmul.f32 40.0, %v1329_v63  ;;  %v1415_v6 = vpop.eup %1414  ;;  %v836_v49 = vmul.f32 -2.0, %v1329_v63 }
 0x173   :  { %vm692_vm15 = vmand %vm2137_vm9, %vm676_vm10  ;;  %vm796_vm1 = vcmp.gt.f32.partialorder %v700_v25, 0.0  ;;  %v2508_v45 = vsel %vm772_vm3, %v644_v61, 0.0  ;;  %v2514_v62 = vadd.f32 -0.5, %v2864_v28  ;;  %v1317_v52 = vadd.f32 -0.1, %v2097_v54 }
 0x174   :  { %v844_v30 = vsel %vm796_vm1, %v828_v34, -1e+30  ;;  %v2510_v9 = vsel %vm692_vm15, %v644_v61, 0.0  ;;  %vm868_vm7 = vcmp.gt.f32.partialorder %v2508_v45, 0.0  ;;  %v1417_v21 = vpop.eup %1416  ;;  %v515_v57 = vpop.xlane.xlu0 %514  ;;  %v947_v23 = vmul.f32 %v1415_v6, %v2425_v29  ;;  %v2877_v6 = vld [vmem:[#allocation4_spill] sm:$0xff] }
 0x175   :  { %v910_v43 = vmul.f32 1.442695, %v844_v30  ;;  %vm804_vm9 = vcmp.gt.f32.partialorder %v2510_v9, 0.0  ;;  %v900_v44 = vsel %vm868_vm7, %v884_v5, -1e+30  ;;  %v1419_v31 = vpop.eup %1418  ;;  %v2518_v58 = vmul.f32 %v1417_v21, %v784_v8  ;;  %v453_v22 = vpop.xlane.xlu1 %452 }
 0x176   :  { %v852_v12 = vsel %vm804_vm9, %v836_v49, -1e+30  ;;  %v1006_v7 = vmul.f32 1.442695, %v900_v44  ;;  %v1421_v37 = vpop.eup %1420  ;;  %v944_v26 = vmul.f32 %v1419_v31, %v2469_v3  ;;  %v2523_v14 = vadd.f32 -0.5, %v2866_v1  ;;  %v445_v40 = vpop.xlane.xlu2 %444  ;;  %972 = vadd.xlane.f32.xlu2 %v947_v23  ;;  %v2868_v3 = vld [vmem:[#allocation22_spill] sm:$0xff] }
 0x177   :  { %1422 = vpow2.f32 %v910_v43  ;;  %v926_v36 = vmul.f32 1.442695, %v852_v12  ;;  %vm680_vm5 = vcmp.lt.f32.partialorder %v1317_v52, %v515_v57  ;;  %v2526_v54 = vmul.f32 %v1421_v37, %v2473_v55  ;;  %v2869_v55 = vld [vmem:[#allocation8_spill] sm:$0xff]  ;;  %v2879_v49 = vld [vmem:[#allocation21_spill] sm:$0xff] }
 0x178   :  { %1424 = vpow2.f32 %v1006_v7  ;;  %v637_v8 = vsel %vm621_vm14, %v2478_v0, 0.0  ;;  %vm696_vm0 = vmand %vm2113_vm2, %vm680_vm5  ;;  %vm753_vm6 = vcmp.gt.f32.partialorder %v737_v50, %v453_v22  ;;  %vm749_vm11 = vcmp.gt.f32.partialorder %v733_v20, %v445_v40 }
 0x179   :  { %1426 = vpow2.f32 %v926_v36  ;;  %v2536_v60 = vmul.f32 %v2220_v10, %v2868_v3  ;;  %vm633_vm4 = vcmp.gt.f32.partialorder %v2498_v19, %v2227_v13  ;;  %vm2870_vm10 = vnez %v2869_v55  ;;  %1052 = vadd.xlane.f32.xlu1 %v2439_v42  ;;  %v2880_v55 = vld [vmem:[#allocation3_spill] sm:$0xff] }
 0x17a   :  { %vm769_vm8 = vmand %vm2870_vm10, %vm753_vm6  ;;  %v712_v53 = vsel %vm696_vm0, %v2459_v38, 0.0  ;;  %v840_v0 = vmul.f32 -2.0, %v2455_v39  ;;  %vm2872_vm2 = vnez %v2871_v4  ;;  %v1306_v24 = vadd.f32 -0.1, %v2866_v1  ;;  %v2873_v39 = vld [vmem:[#allocation18_spill] sm:$0xff] }
 0x17b   :  { %vm765_vm14 = vmand %vm2872_vm2, %vm749_vm11  ;;  %vm808_vm3 = vcmp.gt.f32.partialorder %v712_v53, 0.0  ;;  %v2549_v10 = vsel %vm769_vm8, %v2412_v16, 0.0  ;;  %v881_v15 = vmul.f32 40.0, %v2514_v62  ;;  %v877_v42 = vmul.f32 40.0, %v2523_v14 }
 0x17c   :  { %v856_v48 = vsel %vm808_vm3, %v840_v0, -1e+30  ;;  %vm865_vm15 = vcmp.gt.f32.partialorder %v2549_v10, 0.0  ;;  %v2553_v32 = vsel %vm765_vm14, %v637_v8, 0.0  ;;  %v2557_v18 = vadd.f32 -0.5, %v2873_v39  ;;  %v469_v56 = vpop.xlane.xlu0 %468 }
 0x17d   :  { %v1423_v38 = vpop.eup %1422  ;;  %v934_v47 = vmul.f32 1.442695, %v856_v48  ;;  %v897_v63 = vsel %vm865_vm15, %v881_v15, -1e+30  ;;  %vm861_vm1 = vcmp.gt.f32.partialorder %v2553_v32, 0.0  ;;  %vm2875_vm7 = vcmp.eq.s32.totalorder %v2874_v51, %v1731_v2  ;;  %v493_v1 = vpop.xlane.xlu1 %492 }
 0x17e   :  { %v1425_v46 = vpop.eup %1424  ;;  %v745_v61 = vadd.f32 0.1, %v2873_v39  ;;  %v940_v41 = vmul.f32 %v1423_v38, %v700_v25  ;;  %v1000_v35 = vmul.f32 1.442695, %v897_v63  ;;  %v893_v11 = vsel %vm861_vm1, %v877_v42, -1e+30  ;;  %vm729_vm9 = vmxor %vm2875_vm7, %vm2781_vm13  ;;  %v501_v25 = vpop.xlane.xlu2 %500  ;;  %966 = vadd.xlane.f32.xlu2 %v944_v26 }
 0x17f   :  { %v1427_v27 = vpop.eup %1426  ;;  %v1310_v17 = vadd.f32 -0.1, %v2864_v28  ;;  %1428 = vpow2.f32 %v934_v47  ;;  %v2563_v50 = vmul.f32 %v1425_v46, %v2508_v45  ;;  %v992_v34 = vmul.f32 1.442695, %v893_v11 }
 0x180   :  { %vm761_vm5 = vcmp.gt.f32.partialorder %v745_v61, %v469_v56  ;;  %958 = vadd.xlane.f32.xlu0 %v940_v41  ;;  %v948_v20 = vmul.f32 %v1427_v27, %v2510_v9  ;;  %1430 = vpow2.f32 %v1000_v35  ;;  %v649_v28 = vsel %vm633_vm4, %v2498_v19, 0.0 }
 0x181   :  { %vm777_vm0 = vmand %vm729_vm9, %vm761_vm5  ;;  %vm669_vm6 = vcmp.lt.f32.partialorder %v1306_v24, %v493_v1  ;;  %vm673_vm11 = vcmp.lt.f32.partialorder %v1310_v17, %v501_v25  ;;  %1432 = vpow2.f32 %v992_v34  ;;  %vm629_vm13 = vcmp.gt.f32.partialorder %v2536_v60, %v2227_v13  ;;  %1046 = vadd.xlane.f32.xlu1 %v2518_v58  ;;  %v2884_v24 = vld [vmem:[#allocation10_spill] sm:$0xff] }
 0x182   :  { %vm685_vm10 = vmand %vm1812_vm12, %vm669_vm6  ;;  %v793_v45 = vsel %vm777_vm0, %v649_v28, 0.0  ;;  %v889_v5 = vmul.f32 40.0, %v2557_v18  ;;  %vm2878_vm8 = vnez %v2877_v6  ;;  %v829_v30 = vmul.f32 -2.0, %v2523_v14 }
 0x183   :  { %vm689_vm2 = vmand %vm2878_vm8, %vm673_vm11  ;;  %v701_v19 = vsel %vm685_vm10, %v637_v8, 0.0  ;;  %v833_v9 = vmul.f32 -2.0, %v2514_v62  ;;  %vm873_vm4 = vcmp.gt.f32.partialorder %v793_v45, 0.0  ;;  %v1314_v21 = vadd.f32 -0.1, %v2879_v49 }
 0x184   :  { %vm797_vm14 = vcmp.gt.f32.partialorder %v701_v19, 0.0  ;;  %v705_v43 = vsel %vm689_vm2, %v2412_v16, 0.0  ;;  %v905_v44 = vsel %vm873_vm4, %v889_v5, -1e+30  ;;  %v1330_v52 = vadd.f32 -0.5, %v2879_v49  ;;  %v509_v36 = vpop.xlane.xlu0 %508 }
 0x185   :  { %v1429_v31 = vpop.eup %1428  ;;  %v845_v58 = vsel %vm797_vm14, %v829_v30, -1e+30  ;;  %vm801_vm12 = vcmp.gt.f32.partialorder %v705_v43, 0.0  ;;  %v1016_v12 = vmul.f32 1.442695, %v905_v44  ;;  %vm677_vm3 = vcmp.lt.f32.partialorder %v1314_v21, %v509_v36  ;;  %v517_v40 = vpop.xlane.xlu1 %516 }
 0x186   :  { %v1431_v7 = vpop.eup %1430  ;;  %v952_v37 = vmul.f32 %v1429_v31, %v712_v53  ;;  %v1318_v57 = vadd.f32 -0.1, %v2873_v39  ;;  %v912_v23 = vmul.f32 1.442695, %v845_v58  ;;  %v849_v26 = vsel %vm801_vm12, %v833_v9, -1e+30  ;;  %v461_v8 = vpop.xlane.xlu2 %460  ;;  %1038 = vadd.xlane.f32.xlu2 %v2482_v59 }
 0x187   :  { %v1433_v62 = vpop.eup %1432  ;;  %v741_v14 = vadd.f32 0.1, %v2879_v49  ;;  %v920_v22 = vmul.f32 1.442695, %v849_v26  ;;  %v1025_v16 = vmul.f32 %v1431_v7, %v2549_v10  ;;  %1434 = vpow2.f32 %v1016_v12  ;;  %v2882_v53 = vld [vmem:[#allocation19_spill] sm:$0xff] }
 0x188   :  { %982 = vadd.xlane.f32.xlu0 %v952_v37  ;;  %1436 = vpow2.f32 %v912_v23  ;;  %v1021_v29 = vmul.f32 %v1433_v62, %v2553_v32  ;;  %v645_v3 = vsel %vm629_vm13, %v2536_v60, 0.0  ;;  %vm2881_vm15 = vnez %v2880_v55 }
 0x189   :  { %vm693_vm1 = vmand %vm2881_vm15, %vm677_vm3  ;;  %vm681_vm7 = vcmp.lt.f32.partialorder %v1318_v57, %v517_v40  ;;  %vm757_vm9 = vcmp.gt.f32.partialorder %v741_v14, %v461_v8  ;;  %1438 = vpow2.f32 %v920_v22  ;;  %vm2883_vm5 = vnez %v2882_v53  ;;  %974 = vadd.xlane.f32.xlu1 %v948_v20 }
 0x18a   :  { %vm697_vm0 = vmand %vm2883_vm5, %vm681_vm7  ;;  %v709_v0 = vsel %vm693_vm1, %v645_v3, 0.0  ;;  %v837_v4 = vmul.f32 -2.0, %v1330_v52  ;;  %vm2885_vm6 = vnez %v2884_v24  ;;  %v841_v13 = vmul.f32 -2.0, %v2557_v18 }
 0x18b   :  { %vm773_vm11 = vmand %vm2885_vm6, %vm757_vm9  ;;  %v713_v10 = vsel %vm697_vm0, %v649_v28, 0.0  ;;  %vm805_vm13 = vcmp.gt.f32.partialorder %v709_v0, 0.0  ;;  %v885_v48 = vmul.f32 40.0, %v1330_v52  ;;  %vm1210_vm2 = vcmask 7168  }
 0x18c   :  { %vm809_vm10 = vcmp.gt.f32.partialorder %v713_v10, 0.0  ;;  %v853_v60 = vsel %vm805_vm13, %v837_v4, -1e+30  ;;  %v789_v15 = vsel %vm773_vm11, %v645_v3, 0.0 }
 0x18d   :  { %v1435_v32 = vpop.eup %1434  ;;  %v857_v59 = vsel %vm809_vm10, %v841_v13, -1e+30  ;;  %v928_v42 = vmul.f32 1.442695, %v853_v60  ;;  %vm869_vm8 = vcmp.gt.f32.partialorder %v789_v15, 0.0 }
 0x18e   :  { %v1437_v38 = vpop.eup %1436  ;;  %v936_v39 = vmul.f32 1.442695, %v857_v59  ;;  %v1033_v47 = vmul.f32 %v1435_v32, %v793_v45  ;;  %v901_v63 = vsel %vm869_vm8, %v885_v48, -1e+30 }
 0x18f   :  { %v1439_v46 = vpop.eup %1438  ;;  %v941_v61 = vmul.f32 %v1437_v38, %v701_v19  ;;  %1440 = vpow2.f32 %v928_v42  ;;  %v1008_v41 = vmul.f32 1.442695, %v901_v63 }
 0x190   :  { %1054 = vadd.xlane.f32.xlu0 %v2563_v50  ;;  %v945_v18 = vmul.f32 %v1439_v46, %v705_v43  ;;  %1442 = vpow2.f32 %v936_v39 }
 0x191   :  { %960 = vadd.xlane.f32.xlu2 %v941_v61  ;;  %1444 = vpow2.f32 %v1008_v41 }
 0x192   :  { %968 = vadd.xlane.f32.xlu1 %v945_v18 }
 0x195   :  { %v1441_v35 = vpop.eup %1440 }
 0x196   :  { %v1443_v11 = vpop.eup %1442  ;;  %v949_v27 = vmul.f32 %v1441_v35, %v709_v0 }
 0x197   :  { %v1445_v56 = vpop.eup %1444  ;;  %v953_v17 = vmul.f32 %v1443_v11, %v713_v10 }
 0x198   :  { %1048 = vadd.xlane.f32.xlu0 %v1025_v16  ;;  %v1029_v34 = vmul.f32 %v1445_v56, %v789_v15 }
 0x199   :  { %984 = vadd.xlane.f32.xlu2 %v953_v17 }
 0x19a   :  { %1040 = vadd.xlane.f32.xlu1 %v1021_v29 }
 0x1a0   :  { %976 = vadd.xlane.f32.xlu0 %v949_v27 }
 0x1a1   :  { %1056 = vadd.xlane.f32.xlu2 %v1029_v34 }
 0x1a2   :  { %1064 = vadd.xlane.f32.xlu1 %v1033_v47 }
 0x1a8   :  { %1060 = vadd.xlane.f32.xlu0 %v2445_v33 }
 0x1a9   :  { %1062 = vadd.xlane.f32.xlu2 %v2526_v54 }
 0x1b9   :  { %v963_v50 = vpop.xlane.xlu1 %962 }
 0x1ba   :  { %v1070_v51 = vadd.f32 1.0, %v963_v50 }
 0x1bc   :  { %1446 = vlog2.f32 %v1070_v51 }
 0x1c1   :  { %v1035_v1 = vpop.xlane.xlu1 %1034 }
 0x1c2   :  { %v1043_v25 = vpop.xlane.xlu0 %1042  ;;  %v1130_v28 = vadd.f32 1.0, %v1035_v1  ;;  %v1447_v2 = vpop.eup %1446 }
 0x1c3   :  { %v1134_v20 = vadd.f32 1.0, %v1043_v25  ;;  %v1091_v6 = vmul.f32 0.6931472, %v1447_v2 }
 0x1c5   :  { %1448 = vlog2.f32 %v1134_v20  ;;  %v1118_v21 = vmul.f32 0.5, %v1091_v6 }
 0x1c6   :  { %1450 = vlog2.f32 %v1130_v28 }
 0x1c9   :  { %v1059_v45 = vpop.xlane.xlu1 %1058  ;;  %v955_v5 = vpop.xlane.xlu2 %954 }
 0x1ca   :  { %v971_v19 = vpop.xlane.xlu0 %970  ;;  %v1066_v30 = vadd.f32 1.0, %v955_v5  ;;  %v1142_v33 = vadd.f32 1.0, %v1059_v45 }
 0x1cb   :  { %v1449_v9 = vpop.eup %1448  ;;  %v1074_v37 = vadd.f32 1.0, %v971_v19 }
 0x1cc   :  { %v1155_v49 = vmul.f32 0.6931472, %v1449_v9  ;;  %1452 = vlog2.f32 %v1066_v30  ;;  %v1451_v43 = vpop.eup %1450 }
 0x1cd   :  { %1454 = vlog2.f32 %v1142_v33  ;;  %v1147_v12 = vmul.f32 0.6931472, %v1451_v43 }
 0x1ce   :  { %v1182_v54 = vmul.f32 0.025, %v1155_v49 }
 0x1cf   :  { %v1178_v26 = vmul.f32 0.025, %v1147_v12 }
 0x1d0   :  { %v1198_v44 = vadd.f32 %v1182_v54, %v1118_v21 }
 0x1d1   :  { %v979_v31 = vpop.xlane.xlu2 %978 }
 0x1d2   :  { %1215 = vst.msk [vmem:[%s2680_s7 + $0x20] sm:$0xff] %vm1210_vm2, %v1198_v44  ;;  %v965_v52 = vpop.xlane.xlu0 %964  ;;  %v1078_v58 = vadd.f32 1.0, %v979_v31  ;;  %v1453_v7 = vpop.eup %1452 }
 0x1d3   :  { %v1083_v57 = vmul.f32 0.6931472, %v1453_v7  ;;  %v1455_v23 = vpop.eup %1454  ;;  %v1071_v0 = vadd.f32 1.0, %v965_v52 }
 0x1d4   :  { %1456 = vlog2.f32 %v1078_v58  ;;  %v1171_v36 = vmul.f32 0.6931472, %v1455_v23 }
 0x1d5   :  { %v1114_v62 = vmul.f32 0.5, %v1083_v57  ;;  %1458 = vlog2.f32 %v1074_v37 }
 0x1d6   :  { %v1190_v4 = vmul.f32 0.025, %v1171_v36 }
 0x1d7   :  { %v1194_v14 = vadd.f32 %v1178_v26, %v1114_v62 }
 0x1d9   :  { %v1051_v22 = vpop.xlane.xlu2 %1050  ;;  %1211 = vst.msk [vmem:[%s2680_s7] sm:$0xff] %vm1210_vm2, %v1194_v14 }
 0x1da   :  { %v1457_v16 = vpop.eup %1456  ;;  %v1037_v40 = vpop.xlane.xlu0 %1036  ;;  %v1138_v29 = vadd.f32 1.0, %v1051_v22 }
 0x1db   :  { %v1107_v3 = vmul.f32 0.6931472, %v1457_v16  ;;  %v1131_v55 = vadd.f32 1.0, %v1037_v40  ;;  %v1459_v10 = vpop.eup %1458 }
 0x1dc   :  { %v957_v8 = vpop.xlane.xlu1 %956  ;;  %1460 = vlog2.f32 %v1138_v29  ;;  %v1099_v60 = vmul.f32 0.6931472, %v1459_v10 }
 0x1dd   :  { %v1067_v53 = vadd.f32 1.0, %v957_v8  ;;  %v1126_v24 = vmul.f32 0.5, %v1107_v3  ;;  %1462 = vlog2.f32 %v1131_v55 }
 0x1de   :  { %v1122_v63 = vmul.f32 0.5, %v1099_v60 }
 0x1df   :  { %1464 = vlog2.f32 %v1067_v53  ;;  %v1206_v13 = vadd.f32 %v1190_v4, %v1126_v24 }
 0x1e0   :  { %1466 = vlog2.f32 %v1071_v0 }
 0x1e1   :  { %1223 = vst.msk [vmem:[%s2680_s7 + $0x60] sm:$0xff] %vm1210_vm2, %v1206_v13  ;;  %v1045_v15 = vpop.xlane.xlu2 %1044 }
 0x1e2   :  { %v1461_v48 = vpop.eup %1460  ;;  %v1135_v59 = vadd.f32 1.0, %v1045_v15 }
 0x1e3   :  { %v1463_v42 = vpop.eup %1462  ;;  %v1163_v38 = vmul.f32 0.6931472, %v1461_v48 }
 0x1e4   :  { %v2618_v32 = vpop.xlane.xlu1 %980  ;;  %v1149_v47 = vmul.f32 0.6931472, %v1463_v42  ;;  %1468 = vlog2.f32 %v1135_v59 }
 0x1e5   :  { %v1465_v39 = vpop.eup %1464  ;;  %v1186_v61 = vmul.f32 0.025, %v1163_v38 }
 0x1e6   :  { %v1085_v46 = vmul.f32 0.6931472, %v1465_v39  ;;  %v1467_v41 = vpop.eup %1466  ;;  %v1179_v18 = vmul.f32 0.025, %v1149_v47 }
 0x1e7   :  { %v1202_v11 = vadd.f32 %v1186_v61, %v1122_v63  ;;  %v1093_v27 = vmul.f32 0.6931472, %v1467_v41 }
 0x1e8   :  { %v1115_v35 = vmul.f32 0.5, %v1085_v46 }
 0x1e9   :  { %1219 = vst.msk [vmem:[%s2680_s7 + $0x40] sm:$0xff] %vm1210_vm2, %v1202_v11  ;;  %v973_v17 = vpop.xlane.xlu2 %972  ;;  %v1119_v20 = vmul.f32 0.5, %v1093_v27 }
 0x1ea   :  { %v1195_v56 = vadd.f32 %v1179_v18, %v1115_v35  ;;  %v1469_v34 = vpop.eup %1468  ;;  %v1075_v51 = vadd.f32 1.0, %v973_v17 }
 0x1eb   :  { %v1157_v1 = vmul.f32 0.6931472, %v1469_v34 }
 0x1ec   :  { %v1053_v50 = vpop.xlane.xlu1 %1052  ;;  %1212 = vst.msk [vmem:[%s2680_s7 + $0x8] sm:$0xff] %vm1210_vm2, %v1195_v56  ;;  %1470 = vlog2.f32 %v1075_v51 }
 0x1ed   :  { %v1139_v25 = vadd.f32 1.0, %v1053_v50  ;;  %v1183_v28 = vmul.f32 0.025, %v1157_v1 }
 0x1ef   :  { %1472 = vlog2.f32 %v1139_v25  ;;  %v1199_v2 = vadd.f32 %v1183_v28, %v1119_v20 }
 0x1f1   :  { %1216 = vst.msk [vmem:[%s2680_s7 + $0x28] sm:$0xff] %vm1210_vm2, %v1199_v2  ;;  %v967_v5 = vpop.xlane.xlu2 %966 }
 0x1f2   :  { %v1471_v6 = vpop.eup %1470  ;;  %v1072_v30 = vadd.f32 1.0, %v967_v5 }
 0x1f3   :  { %v959_v45 = vpop.xlane.xlu0 %958  ;;  %v1101_v49 = vmul.f32 0.6931472, %v1471_v6 }
 0x1f4   :  { %v1047_v19 = vpop.xlane.xlu1 %1046  ;;  %v1068_v54 = vadd.f32 1.0, %v959_v45  ;;  %1474 = vlog2.f32 %v1072_v30  ;;  %v1079_v45 = vadd.f32 1.0, %v2618_v32 }
 0x1f5   :  { %v1473_v9 = vpop.eup %1472  ;;  %v1136_v33 = vadd.f32 1.0, %v1047_v19  ;;  %v1123_v43 = vmul.f32 0.5, %v1101_v49 }
 0x1f6   :  { %v1165_v21 = vmul.f32 0.6931472, %v1473_v9 }
 0x1f7   :  { %1476 = vlog2.f32 %v1136_v33 }
 0x1f8   :  { %v1187_v44 = vmul.f32 0.025, %v1165_v21  ;;  %1478 = vlog2.f32 %v1068_v54 }
 0x1f9   :  { %v1039_v58 = vpop.xlane.xlu2 %1038 }
 0x1fa   :  { %v1203_v31 = vadd.f32 %v1187_v44, %v1123_v43  ;;  %v1475_v12 = vpop.eup %1474  ;;  %v1132_v37 = vadd.f32 1.0, %v1039_v58 }
 0x1fb   :  { %v983_v52 = vpop.xlane.xlu0 %982  ;;  %v1095_v23 = vmul.f32 0.6931472, %v1475_v12 }
 0x1fc   :  { %1220 = vst.msk [vmem:[%s2680_s7 + $0x48] sm:$0xff] %vm1210_vm2, %v1203_v31  ;;  %v975_v7 = vpop.xlane.xlu1 %974  ;;  %1480 = vlog2.f32 %v1132_v37  ;;  %v1080_v5 = vadd.f32 1.0, %v983_v52 }
 0x1fd   :  { %v1477_v57 = vpop.eup %1476  ;;  %v1076_v26 = vadd.f32 1.0, %v975_v7  ;;  %v1120_v36 = vmul.f32 0.5, %v1095_v23 }
 0x1fe   :  { %v1159_v62 = vmul.f32 0.6931472, %v1477_v57  ;;  %v1479_v14 = vpop.eup %1478 }
 0x1ff   :  { %1482 = vlog2.f32 %v1076_v26  ;;  %v1087_v8 = vmul.f32 0.6931472, %v1479_v14 }
 0x200   :  { %v1184_v22 = vmul.f32 0.025, %v1159_v62 }
 0x201   :  { %v1116_v10 = vmul.f32 0.5, %v1087_v8 }
 0x202   :  { %v1200_v16 = vadd.f32 %v1184_v22, %v1120_v36  ;;  %v1481_v55 = vpop.eup %1480 }
 0x203   :  { %v1055_v40 = vpop.xlane.xlu0 %1054  ;;  %v1151_v0 = vmul.f32 0.6931472, %v1481_v55 }
 0x204   :  { %v1140_v29 = vadd.f32 1.0, %v1055_v40  ;;  %v961_v3 = vpop.xlane.xlu2 %960  ;;  %1217 = vst.msk [vmem:[%s2680_s7 + $0x30] sm:$0xff] %vm1210_vm2, %v1200_v16 }
 0x205   :  { %v969_v53 = vpop.xlane.xlu1 %968  ;;  %v1483_v24 = vpop.eup %1482  ;;  %v1180_v13 = vmul.f32 0.025, %v1151_v0  ;;  %v1069_v60 = vadd.f32 1.0, %v961_v3 }
 0x206   :  { %1484 = vlog2.f32 %v1140_v29  ;;  %v1073_v4 = vadd.f32 1.0, %v969_v53  ;;  %v1103_v48 = vmul.f32 0.6931472, %v1483_v24 }
 0x207   :  { %v1196_v15 = vadd.f32 %v1180_v13, %v1116_v10 }
 0x208   :  { %1486 = vlog2.f32 %v1073_v4  ;;  %v1124_v61 = vmul.f32 0.5, %v1103_v48 }
 0x209   :  { %1213 = vst.msk [vmem:[%s2680_s7 + $0x10] sm:$0xff] %vm1210_vm2, %v1196_v15  ;;  %1488 = vlog2.f32 %v1069_v60 }
 0x20b   :  { %v1049_v59 = vpop.xlane.xlu0 %1048 }
 0x20c   :  { %v1485_v42 = vpop.eup %1484  ;;  %v1137_v38 = vadd.f32 1.0, %v1049_v59  ;;  %v985_v39 = vpop.xlane.xlu2 %984 }
 0x20d   :  { %v1167_v47 = vmul.f32 0.6931472, %v1485_v42  ;;  %v1041_v63 = vpop.xlane.xlu1 %1040  ;;  %v1081_v35 = vadd.f32 1.0, %v985_v39 }
 0x20e   :  { %1490 = vlog2.f32 %v1137_v38  ;;  %v1133_v46 = vadd.f32 1.0, %v1041_v63  ;;  %v1487_v18 = vpop.eup %1486 }
 0x20f   :  { %v1188_v41 = vmul.f32 0.025, %v1167_v47  ;;  %v1489_v27 = vpop.eup %1488  ;;  %v1097_v56 = vmul.f32 0.6931472, %v1487_v18 }
 0x210   :  { %1492 = vlog2.f32 %v1133_v46  ;;  %v1089_v1 = vmul.f32 0.6931472, %v1489_v27 }
 0x211   :  { %v1204_v11 = vadd.f32 %v1188_v41, %v1124_v61  ;;  %1494 = vlog2.f32 %v1081_v35  ;;  %v1121_v19 = vmul.f32 0.5, %v1097_v56 }
 0x212   :  { %v1117_v49 = vmul.f32 0.5, %v1089_v1 }
 0x213   :  { %1221 = vst.msk [vmem:[%s2680_s7 + $0x50] sm:$0xff] %vm1210_vm2, %v1204_v11  ;;  %v977_v17 = vpop.xlane.xlu0 %976 }
 0x214   :  { %v1491_v34 = vpop.eup %1490  ;;  %v1077_v50 = vadd.f32 1.0, %v977_v17  ;;  %v1057_v51 = vpop.xlane.xlu2 %1056 }
 0x215   :  { %v1161_v25 = vmul.f32 0.6931472, %v1491_v34  ;;  %v1065_v20 = vpop.xlane.xlu1 %1064  ;;  %v1141_v28 = vadd.f32 1.0, %v1057_v51 }
 0x216   :  { %v1493_v2 = vpop.eup %1492  ;;  %1496 = vlog2.f32 %v1077_v50  ;;  %v1145_v6 = vadd.f32 1.0, %v1065_v20 }
 0x217   :  { %v1185_v30 = vmul.f32 0.025, %v1161_v25  ;;  %v1153_v9 = vmul.f32 0.6931472, %v1493_v2  ;;  %1498 = vlog2.f32 %v1141_v28  ;;  %v1495_v54 = vpop.eup %1494 }
 0x218   :  { %1500 = vlog2.f32 %v1145_v6  ;;  %v1113_v12 = vmul.f32 0.6931472, %v1495_v54 }
 0x219   :  { %v1201_v33 = vadd.f32 %v1185_v30, %v1121_v19  ;;  %v1181_v21 = vmul.f32 0.025, %v1153_v9  ;;  %1502 = vlog2.f32 %v1079_v45 }
 0x21a   :  { %1504 = vlog2.f32 %v1080_v5  ;;  %v1129_v16 = vmul.f32 0.5, %v1113_v12 }
 0x21b   :  { %1218 = vst.msk [vmem:[%s2680_s7 + $0x38] sm:$0xff] %vm1210_vm2, %v1201_v33  ;;  %v1197_v32 = vadd.f32 %v1181_v21, %v1117_v49  ;;  %v1061_v43 = vpop.xlane.xlu0 %1060 }
 0x21c   :  { %v1497_v44 = vpop.eup %1496  ;;  %v1143_v31 = vadd.f32 1.0, %v1061_v43  ;;  %v1063_v52 = vpop.xlane.xlu2 %1062 }
 0x21d   :  { %v1499_v58 = vpop.eup %1498  ;;  %1214 = vst.msk [vmem:[%s2680_s7 + $0x18] sm:$0xff] %vm1210_vm2, %v1197_v32  ;;  %v1105_v7 = vmul.f32 0.6931472, %v1497_v44  ;;  %v1144_v37 = vadd.f32 1.0, %v1063_v52 }
 0x21e   :  { %v1501_v57 = vpop.eup %1500  ;;  %v1169_v23 = vmul.f32 0.6931472, %v1499_v58  ;;  %1506 = vlog2.f32 %v1143_v31 }
 0x21f   :  { %v1177_v26 = vmul.f32 0.6931472, %v1501_v57  ;;  %1508 = vlog2.f32 %v1144_v37  ;;  %v1503_v62 = vpop.eup %1502  ;;  %v1125_v36 = vmul.f32 0.5, %v1105_v7 }
 0x220   :  { %v1189_v14 = vmul.f32 0.025, %v1169_v23  ;;  %v1505_v22 = vpop.eup %1504  ;;  %v1109_v29 = vmul.f32 0.6931472, %v1503_v62 }
 0x221   :  { %v1193_v40 = vmul.f32 0.025, %v1177_v26  ;;  %v1111_v53 = vmul.f32 0.6931472, %v1505_v22 }
 0x222   :  { %v1205_v8 = vadd.f32 %v1189_v14, %v1125_v36  ;;  %v1127_v10 = vmul.f32 0.5, %v1109_v29 }
 0x223   :  { %v1209_v3 = vadd.f32 %v1193_v40, %v1129_v16  ;;  %v1128_v60 = vmul.f32 0.5, %v1111_v53 }
 0x224   :  { %v1507_v55 = vpop.eup %1506  ;;  %1222 = vst.msk [vmem:[%s2680_s7 + $0x58] sm:$0xff] %vm1210_vm2, %v1205_v8 }
 0x225   :  { %v1509_v0 = vpop.eup %1508  ;;  %1226 = vst.msk [vmem:[%s2680_s7 + $0x78] sm:$0xff] %vm1210_vm2, %v1209_v3  ;;  %v1173_v4 = vmul.f32 0.6931472, %v1507_v55 }
 0x226   :  { %v1175_v24 = vmul.f32 0.6931472, %v1509_v0 }
 0x227   :  { %v1191_v13 = vmul.f32 0.025, %v1173_v4 }
 0x228   :  { %v1192_v15 = vmul.f32 0.025, %v1175_v24 }
 0x229   :  { %v1207_v48 = vadd.f32 %v1191_v13, %v1127_v10 }
 0x22a   :  { %v1208_v59 = vadd.f32 %v1192_v15, %v1128_v60 }
 0x22b   :  { %1224 = vst.msk [vmem:[%s2680_s7 + $0x68] sm:$0xff] %vm1210_vm2, %v1207_v48 }
 0x22c   :  { %1225 = vst.msk [vmem:[%s2680_s7 + $0x70] sm:$0xff] %vm1210_vm2, %v1208_v59 }

</bundles_post_ra>
